<compile_context>
chip_gen: v7x
topology: tpu7x:2x2x1
jax: 0.10.0
libtpu: 0.0.40
codegen_flags: <defaults>
</compile_context>

<pallas_src>
import numpy as np
import jax
import jax.numpy as jnp
from jax.experimental import pallas as pl
from jax.experimental.pallas import tpu as pltpu

# 'highest' keeps the pure-JAX f32 reference accurate; the in-kernel matmuls
# explicitly request DEFAULT precision on bf16 operands (native single-pass MXU).
jax.config.update("jax_default_matmul_precision", "highest")

# ---- problem sizes (small, consistent with the module defaults, scaled down) ----
N = 64          # total packed tokens
D = 32          # size (model width)
HEADS = 4       # n_heads
ATT = 64        # attention_size (total across heads)
VAL = 64        # value_size / attention hidden_size (total across heads)
HID = 64        # MLP hidden_size
A_H = ATT // HEADS
V_H = VAL // HEADS
_SCALE = 1.0 / float(np.sqrt(A_H))   # standard 1/sqrt(d_head) attention scaling
_NEG = -1e30
_PREC = jax.lax.Precision.DEFAULT


def _rezero_block_kernel(x_ref, bias_ref, wqkv_ref, w1_ref, wpack_ref,
                         bqkv_ref, b12_ref, boa3_ref, out_ref):
  x = x_ref[...]                                   # (N, D) f32
  x_bf = x.astype(jnp.bfloat16)
  bias = bias_ref[...]                             # (N, N) additive segment mask, f32

  # ---------- fused QKV projection: one bf16 MXU matmul, f32 accumulate ----------
  qkv = jnp.dot(x_bf, wqkv_ref[...], precision=_PREC,
                preferred_element_type=jnp.float32) + bqkv_ref[...]   # (N, 3*ATT) f32
  q = qkv[:, 0:ATT].astype(jnp.bfloat16)                  # (N, ATT); scale pre-folded
  kT = qkv[:, ATT:2 * ATT].T.astype(jnp.bfloat16)         # (ATT, N); one f32 transpose
  v = qkv[:, 2 * ATT:2 * ATT + VAL].astype(jnp.bfloat16)  # (N, VAL)

  # ---------- unpack weight / bias slabs (static slices, done once) ----------
  wpack = wpack_ref[...]                           # (VAL, D+HID+D) bf16 = [wo | w2 | w3]
  wo = wpack[:, 0:D]
  w2 = wpack[:, D:D + HID]
  w3 = wpack[:, D + HID:D + HID + D]
  b12 = b12_ref[...]                               # (1, 2*HID) f32 = [b1 | b2]
  b1 = b12[:, 0:HID]
  b2 = b12[:, HID:2 * HID]
  boa3 = boa3_ref[...]                             # (1, 3*D) f32 = [bo | alpha | b3]
  bo = boa3[:, 0:D]
  alpha = boa3[:, D:2 * D]
  b3 = boa3[:, 2 * D:3 * D]

  # ---------- segment-masked multi-head attention ----------
  # Heads statically unrolled (4); each head's context is accumulated straight
  # into the output projection, so no concatenate / lane re-pack is needed.
  att = jnp.zeros((N, D), jnp.float32)
  for h in range(HEADS):
    qh = q[:, h * A_H:(h + 1) * A_H]               # (N, A_H)
    khT = kT[h * A_H:(h + 1) * A_H, :]             # (A_H, N)
    vh = v[:, h * V_H:(h + 1) * V_H]               # (N, V_H)
    s = jnp.dot(qh, khT, precision=_PREC,
                preferred_element_type=jnp.float32) + bias
    m = jnp.max(s, axis=-1, keepdims=True)
    p = jnp.exp(s - m)                             # f32, EUP
    denom = jnp.sum(p, axis=-1, keepdims=True)
    ctx = jnp.dot(p.astype(jnp.bfloat16), vh, precision=_PREC,
                  preferred_element_type=jnp.float32)          # (N, V_H)
    ctx = ctx * pl.reciprocal(denom, approx=True)  # EUP reciprocal, not VPU divide
    att = att + jnp.dot(ctx.astype(jnp.bfloat16), wo[h * V_H:(h + 1) * V_H, :],
                        precision=_PREC, preferred_element_type=jnp.float32)
  att = att + bo

  # TODO(synk): dropout_1 / dropout_2 are identity (inference); no in-kernel RNG masking.
  y = x + alpha * att                              # ReZero #1 (f32 VPU math)

  # ---------- feed-forward MLP (depth=2, batch_norm=False) ----------
  h1 = jnp.maximum(jnp.dot(y.astype(jnp.bfloat16), w1_ref[...], precision=_PREC,
                           preferred_element_type=jnp.float32) + b1, 0.0)
  h2 = jnp.maximum(jnp.dot(h1.astype(jnp.bfloat16), w2, precision=_PREC,
                           preferred_element_type=jnp.float32) + b2, 0.0)
  ff = jnp.dot(h2.astype(jnp.bfloat16), w3, precision=_PREC,
               preferred_element_type=jnp.float32) + b3

  out_ref[...] = y + alpha * ff                    # ReZero #2 (shared alpha)


def _full_spec(shape):
  nd = len(shape)
  return pl.BlockSpec(shape, lambda i, _nd=nd: (0,) * _nd)


def pack_params(p):
  """One-time packing: fold 1/sqrt(d_head) into the Q projection, fuse Q|K|V,
  cast matmul weights to bf16, and pack the small biases into lane-dense slabs."""
  f32 = jnp.float32
  return {
      'wqkv': jnp.concatenate([p['wq'] * _SCALE, p['wk'], p['wv']],
                              axis=1).astype(jnp.bfloat16),            # (D, 3*ATT)
      'bqkv': jnp.concatenate([p['bq'] * _SCALE, p['bk'], p['bv']],
                              axis=1).astype(f32),                     # (1, 3*ATT)
      'w1': p['w1'].astype(jnp.bfloat16),                              # (D, HID)
      'wpack': jnp.concatenate([p['wo'], p['w2'], p['w3']],
                               axis=1).astype(jnp.bfloat16),           # (VAL, D+HID+D)
      'b12': jnp.concatenate([p['b1'], p['b2']], axis=1).astype(f32),  # (1, 2*HID)
      'boa3': jnp.concatenate([p['bo'], p['alpha'], p['b3']],
                              axis=1).astype(f32),                     # (1, 3*D)
  }


@jax.jit
def rezero_transformer_block(x, index, packed):
  idx = index.astype(jnp.int32)
  # Additive segment mask computed once outside the kernel (shared by all heads).
  attn_bias = jnp.where(idx[:, None] == idx[None, :], 0.0, _NEG).astype(jnp.float32)
  args = (x, attn_bias, packed['wqkv'], packed['w1'], packed['wpack'],
          packed['bqkv'], packed['b12'], packed['boa3'])
  return pl.pallas_call(
      _rezero_block_kernel,
      out_shape=jax.ShapeDtypeStruct((N, D), jnp.float32),
      grid=(1,),
      in_specs=[_full_spec(a.shape) for a in args],
      out_specs=_full_spec((N, D)),
      compiler_params=pltpu.CompilerParams(
          dimension_semantics=("arbitrary",)),
  )(*args)


# ---------------- pure-JAX reference (same math, f32, no Pallas) ----------------
def reference(x, index, p):
  idx = index.astype(jnp.int32)
  mask = idx[:, None] == idx[None, :]
  q = x @ p['wq'] + p['bq']
  k = x @ p['wk'] + p['bk']
  v = x @ p['wv'] + p['bv']
  outs = []
  for h in range(HEADS):
    qh = q[:, h * A_H:(h + 1) * A_H]
    kh = k[:, h * A_H:(h + 1) * A_H]
    vh = v[:, h * V_H:(h + 1) * V_H]
    s = (qh @ kh.T) * _SCALE
    s = jnp.where(mask, s, _NEG)
    s = s - jnp.max(s, axis=-1, keepdims=True)
    pw = jnp.exp(s)
    pw = pw / jnp.sum(pw, axis=-1, keepdims=True)
    outs.append(pw @ vh)
  att = jnp.concatenate(outs, axis=-1) @ p['wo'] + p['bo']
  y = x + p['alpha'] * att
  h1 = jax.nn.relu(y @ p['w1'] + p['b1'])
  h2 = jax.nn.relu(h1 @ p['w2'] + p['b2'])
  ff = h2 @ p['w3'] + p['b3']
  return y + p['alpha'] * ff


def make_params(key):
  ks = jax.random.split(key, 8)

  def linear(k, fan_in, fan_out):
    kw, kb = jax.random.split(k)
    bound = 1.0 / np.sqrt(fan_in)
    w = jax.random.uniform(kw, (fan_in, fan_out), jnp.float32, -bound, bound)
    b = jax.random.uniform(kb, (1, fan_out), jnp.float32, -bound, bound)
    return w, b

  p = {}
  p['wq'], p['bq'] = linear(ks[0], D, ATT)
  p['wk'], p['bk'] = linear(ks[1], D, ATT)
  p['wv'], p['bv'] = linear(ks[2], D, VAL)
  p['wo'], p['bo'] = linear(ks[3], VAL, D)
  p['w1'], p['b1'] = linear(ks[4], D, HID)
  p['w2'], p['b2'] = linear(ks[5], HID, HID)
  p['w3'], p['b3'] = linear(ks[6], HID, D)
  # ReZero alpha (per-feature); canonical init is 0, use nonzero for a real test.
  p['alpha'] = jnp.full((1, D), 0.25, dtype=jnp.float32)
  return p


if __name__ == "__main__":
  key = jax.random.PRNGKey(0)
  k_x, k_p = jax.random.split(key)

  x = jax.random.normal(k_x, (N, D), dtype=jnp.float32)
  # three packed sequences of lengths 24, 16, 24
  index = jnp.concatenate([
      jnp.zeros(24, jnp.int32), jnp.ones(16, jnp.int32), jnp.full(24, 2, jnp.int32)])
  params = make_params(k_p)
  packed = pack_params(params)   # one-time fusion / bf16 cast / bias packing

  out = rezero_transformer_block(x, index, packed)
  out = jax.block_until_ready(out)

  ref = reference(x, index, params)
  np.testing.assert_allclose(np.asarray(out), np.asarray(ref), rtol=2e-2, atol=2e-2)

  print("KERNEL_OK")
</pallas_src>

<mosaic_0001>
module attributes {stable_mosaic.version = 11 : i64} {
  func.func @_rezero_block_kernel(%arg0: i32, %arg1: memref<64x32xf32, #tpu.memory_space<vmem>>, %arg2: memref<64x64xf32, #tpu.memory_space<vmem>>, %arg3: memref<32x192xbf16, #tpu.memory_space<vmem>>, %arg4: memref<32x64xbf16, #tpu.memory_space<vmem>>, %arg5: memref<64x128xbf16, #tpu.memory_space<vmem>>, %arg6: memref<1x192xf32, #tpu.memory_space<vmem>>, %arg7: memref<1x128xf32, #tpu.memory_space<vmem>>, %arg8: memref<1x96xf32, #tpu.memory_space<vmem>>, %arg9: memref<64x32xf32, #tpu.memory_space<vmem>>) attributes {dimension_semantics = [#tpu.dimension_semantics<arbitrary>], iteration_bounds = array<i64: 1>, scalar_prefetch = 0 : i64, scratch_operands = 0 : i64, tpu.core_type = #tpu.core_type<tc>, window_params = [{pipeline_mode = #tpu.pipeline_mode<synchronous>, transform_indices = @transform_0, window_bounds = array<i64: 64, 32>}, {pipeline_mode = #tpu.pipeline_mode<synchronous>, transform_indices = @transform_1, window_bounds = array<i64: 64, 64>}, {pipeline_mode = #tpu.pipeline_mode<synchronous>, transform_indices = @transform_2, window_bounds = array<i64: 32, 192>}, {pipeline_mode = #tpu.pipeline_mode<synchronous>, transform_indices = @transform_3, window_bounds = array<i64: 32, 64>}, {pipeline_mode = #tpu.pipeline_mode<synchronous>, transform_indices = @transform_4, window_bounds = array<i64: 64, 128>}, {pipeline_mode = #tpu.pipeline_mode<synchronous>, transform_indices = @transform_5, window_bounds = array<i64: 1, 192>}, {pipeline_mode = #tpu.pipeline_mode<synchronous>, transform_indices = @transform_6, window_bounds = array<i64: 1, 128>}, {pipeline_mode = #tpu.pipeline_mode<synchronous>, transform_indices = @transform_7, window_bounds = array<i64: 1, 96>}, {pipeline_mode = #tpu.pipeline_mode<synchronous>, transform_indices = @transform_8, window_bounds = array<i64: 64, 32>}]} {
    %c0 = arith.constant 0 : index
    %c0_0 = arith.constant 0 : index
    %0 = vector.load %arg1[%c0, %c0_0] : memref<64x32xf32, #tpu.memory_space<vmem>>, vector<64x32xf32>
    %1 = arith.truncf %0 : vector<64x32xf32> to vector<64x32xbf16>
    %c0_1 = arith.constant 0 : index
    %c0_2 = arith.constant 0 : index
    %2 = vector.load %arg2[%c0_1, %c0_2] : memref<64x64xf32, #tpu.memory_space<vmem>>, vector<64x64xf32>
    %c0_3 = arith.constant 0 : index
    %c0_4 = arith.constant 0 : index
    %3 = vector.load %arg3[%c0_3, %c0_4] : memref<32x192xbf16, #tpu.memory_space<vmem>>, vector<32x192xbf16>
    %cst = arith.constant dense<0.000000e+00> : vector<64x192xf32>
    %4 = tpu.matmul %1, %3, %cst {dimension_numbers = #tpu.dot_dimension_numbers<[1], [0], [0], [1], [0, 0, 1, 1], [], []>} : vector<64x32xbf16>, vector<32x192xbf16>, vector<64x192xf32> -> vector<64x192xf32>
    %c0_5 = arith.constant 0 : index
    %c0_6 = arith.constant 0 : index
    %5 = vector.load %arg6[%c0_5, %c0_6] : memref<1x192xf32, #tpu.memory_space<vmem>>, vector<1x192xf32>
    %6 = vector.broadcast %5 : vector<1x192xf32> to vector<64x192xf32>
    %7 = arith.addf %4, %6 : vector<64x192xf32>
    %8 = vector.extract_strided_slice %7 {offsets = [0, 0], sizes = [64, 64], strides = [1, 1]} : vector<64x192xf32> to vector<64x64xf32>
    %9 = arith.truncf %8 : vector<64x64xf32> to vector<64x64xbf16>
    %10 = vector.extract_strided_slice %7 {offsets = [0, 64], sizes = [64, 64], strides = [1, 1]} : vector<64x192xf32> to vector<64x64xf32>
    %11 = tpu.transpose %10, [1, 0] : vector<64x64xf32> -> vector<64x64xf32>
    %12 = arith.truncf %11 : vector<64x64xf32> to vector<64x64xbf16>
    %13 = vector.extract_strided_slice %7 {offsets = [0, 128], sizes = [64, 64], strides = [1, 1]} : vector<64x192xf32> to vector<64x64xf32>
    %14 = arith.truncf %13 : vector<64x64xf32> to vector<64x64xbf16>
    %c0_7 = arith.constant 0 : index
    %c0_8 = arith.constant 0 : index
    %15 = vector.load %arg5[%c0_7, %c0_8] : memref<64x128xbf16, #tpu.memory_space<vmem>>, vector<64x128xbf16>
    %16 = vector.extract_strided_slice %15 {offsets = [0, 0], sizes = [64, 32], strides = [1, 1]} : vector<64x128xbf16> to vector<64x32xbf16>
    %17 = vector.extract_strided_slice %15 {offsets = [0, 32], sizes = [64, 64], strides = [1, 1]} : vector<64x128xbf16> to vector<64x64xbf16>
    %18 = vector.extract_strided_slice %15 {offsets = [0, 96], sizes = [64, 32], strides = [1, 1]} : vector<64x128xbf16> to vector<64x32xbf16>
    %c0_9 = arith.constant 0 : index
    %c0_10 = arith.constant 0 : index
    %19 = vector.load %arg7[%c0_9, %c0_10] : memref<1x128xf32, #tpu.memory_space<vmem>>, vector<1x128xf32>
    %20 = vector.extract_strided_slice %19 {offsets = [0, 0], sizes = [1, 64], strides = [1, 1]} : vector<1x128xf32> to vector<1x64xf32>
    %21 = vector.extract_strided_slice %19 {offsets = [0, 64], sizes = [1, 64], strides = [1, 1]} : vector<1x128xf32> to vector<1x64xf32>
    %c0_11 = arith.constant 0 : index
    %c0_12 = arith.constant 0 : index
    %22 = vector.load %arg8[%c0_11, %c0_12] : memref<1x96xf32, #tpu.memory_space<vmem>>, vector<1x96xf32>
    %23 = vector.extract_strided_slice %22 {offsets = [0, 0], sizes = [1, 32], strides = [1, 1]} : vector<1x96xf32> to vector<1x32xf32>
    %24 = vector.extract_strided_slice %22 {offsets = [0, 32], sizes = [1, 32], strides = [1, 1]} : vector<1x96xf32> to vector<1x32xf32>
    %25 = vector.extract_strided_slice %22 {offsets = [0, 64], sizes = [1, 32], strides = [1, 1]} : vector<1x96xf32> to vector<1x32xf32>
    %cst_13 = arith.constant 0.000000e+00 : f32
    %26 = vector.broadcast %cst_13 : f32 to vector<64x32xf32>
    %27 = vector.extract_strided_slice %9 {offsets = [0, 0], sizes = [64, 16], strides = [1, 1]} : vector<64x64xbf16> to vector<64x16xbf16>
    %28 = vector.extract_strided_slice %12 {offsets = [0, 0], sizes = [16, 64], strides = [1, 1]} : vector<64x64xbf16> to vector<16x64xbf16>
    %29 = vector.extract_strided_slice %14 {offsets = [0, 0], sizes = [64, 16], strides = [1, 1]} : vector<64x64xbf16> to vector<64x16xbf16>
    %cst_14 = arith.constant dense<0.000000e+00> : vector<64x64xf32>
    %30 = tpu.matmul %27, %28, %cst_14 {dimension_numbers = #tpu.dot_dimension_numbers<[1], [0], [0], [1], [0, 0, 1, 1], [], []>} : vector<64x16xbf16>, vector<16x64xbf16>, vector<64x64xf32> -> vector<64x64xf32>
    %31 = arith.addf %30, %2 : vector<64x64xf32>
    %cst_15 = arith.constant dense<0xFF800000> : vector<64xf32>
    %32 = vector.multi_reduction <maximumf>, %31, %cst_15 [1] : vector<64x64xf32> to vector<64xf32>
    %33 = vector.shape_cast %32 : vector<64xf32> to vector<64x1xf32>
    %34 = vector.broadcast %33 : vector<64x1xf32> to vector<64x64xf32>
    %35 = arith.subf %31, %34 : vector<64x64xf32>
    %36 = math.exp %35 : vector<64x64xf32>
    %cst_16 = arith.constant dense<0.000000e+00> : vector<64xf32>
    %37 = vector.multi_reduction <add>, %36, %cst_16 [1] : vector<64x64xf32> to vector<64xf32>
    %38 = vector.shape_cast %37 : vector<64xf32> to vector<64x1xf32>
    %39 = arith.truncf %36 : vector<64x64xf32> to vector<64x64xbf16>
    %cst_17 = arith.constant dense<0.000000e+00> : vector<64x16xf32>
    %40 = tpu.matmul %39, %29, %cst_17 {dimension_numbers = #tpu.dot_dimension_numbers<[1], [0], [0], [1], [0, 0, 1, 1], [], []>} : vector<64x64xbf16>, vector<64x16xbf16>, vector<64x16xf32> -> vector<64x16xf32>
    %41 = tpu.reciprocal %38 {approx = true} : vector<64x1xf32> -> vector<64x1xf32>
    %42 = vector.broadcast %41 : vector<64x1xf32> to vector<64x16xf32>
    %43 = arith.mulf %40, %42 : vector<64x16xf32>
    %44 = arith.truncf %43 : vector<64x16xf32> to vector<64x16xbf16>
    %45 = vector.extract_strided_slice %16 {offsets = [0, 0], sizes = [16, 32], strides = [1, 1]} : vector<64x32xbf16> to vector<16x32xbf16>
    %cst_18 = arith.constant dense<0.000000e+00> : vector<64x32xf32>
    %46 = tpu.matmul %44, %45, %cst_18 {dimension_numbers = #tpu.dot_dimension_numbers<[1], [0], [0], [1], [0, 0, 1, 1], [], []>} : vector<64x16xbf16>, vector<16x32xbf16>, vector<64x32xf32> -> vector<64x32xf32>
    %47 = arith.addf %26, %46 : vector<64x32xf32>
    %48 = vector.extract_strided_slice %9 {offsets = [0, 16], sizes = [64, 16], strides = [1, 1]} : vector<64x64xbf16> to vector<64x16xbf16>
    %49 = vector.extract_strided_slice %12 {offsets = [16, 0], sizes = [16, 64], strides = [1, 1]} : vector<64x64xbf16> to vector<16x64xbf16>
    %50 = vector.extract_strided_slice %14 {offsets = [0, 16], sizes = [64, 16], strides = [1, 1]} : vector<64x64xbf16> to vector<64x16xbf16>
    %cst_19 = arith.constant dense<0.000000e+00> : vector<64x64xf32>
    %51 = tpu.matmul %48, %49, %cst_19 {dimension_numbers = #tpu.dot_dimension_numbers<[1], [0], [0], [1], [0, 0, 1, 1], [], []>} : vector<64x16xbf16>, vector<16x64xbf16>, vector<64x64xf32> -> vector<64x64xf32>
    %52 = arith.addf %51, %2 : vector<64x64xf32>
    %cst_20 = arith.constant dense<0xFF800000> : vector<64xf32>
    %53 = vector.multi_reduction <maximumf>, %52, %cst_20 [1] : vector<64x64xf32> to vector<64xf32>
    %54 = vector.shape_cast %53 : vector<64xf32> to vector<64x1xf32>
    %55 = vector.broadcast %54 : vector<64x1xf32> to vector<64x64xf32>
    %56 = arith.subf %52, %55 : vector<64x64xf32>
    %57 = math.exp %56 : vector<64x64xf32>
    %cst_21 = arith.constant dense<0.000000e+00> : vector<64xf32>
    %58 = vector.multi_reduction <add>, %57, %cst_21 [1] : vector<64x64xf32> to vector<64xf32>
    %59 = vector.shape_cast %58 : vector<64xf32> to vector<64x1xf32>
    %60 = arith.truncf %57 : vector<64x64xf32> to vector<64x64xbf16>
    %cst_22 = arith.constant dense<0.000000e+00> : vector<64x16xf32>
    %61 = tpu.matmul %60, %50, %cst_22 {dimension_numbers = #tpu.dot_dimension_numbers<[1], [0], [0], [1], [0, 0, 1, 1], [], []>} : vector<64x64xbf16>, vector<64x16xbf16>, vector<64x16xf32> -> vector<64x16xf32>
    %62 = tpu.reciprocal %59 {approx = true} : vector<64x1xf32> -> vector<64x1xf32>
    %63 = vector.broadcast %62 : vector<64x1xf32> to vector<64x16xf32>
    %64 = arith.mulf %61, %63 : vector<64x16xf32>
    %65 = arith.truncf %64 : vector<64x16xf32> to vector<64x16xbf16>
    %66 = vector.extract_strided_slice %16 {offsets = [16, 0], sizes = [16, 32], strides = [1, 1]} : vector<64x32xbf16> to vector<16x32xbf16>
    %cst_23 = arith.constant dense<0.000000e+00> : vector<64x32xf32>
    %67 = tpu.matmul %65, %66, %cst_23 {dimension_numbers = #tpu.dot_dimension_numbers<[1], [0], [0], [1], [0, 0, 1, 1], [], []>} : vector<64x16xbf16>, vector<16x32xbf16>, vector<64x32xf32> -> vector<64x32xf32>
    %68 = arith.addf %47, %67 : vector<64x32xf32>
    %69 = vector.extract_strided_slice %9 {offsets = [0, 32], sizes = [64, 16], strides = [1, 1]} : vector<64x64xbf16> to vector<64x16xbf16>
    %70 = vector.extract_strided_slice %12 {offsets = [32, 0], sizes = [16, 64], strides = [1, 1]} : vector<64x64xbf16> to vector<16x64xbf16>
    %71 = vector.extract_strided_slice %14 {offsets = [0, 32], sizes = [64, 16], strides = [1, 1]} : vector<64x64xbf16> to vector<64x16xbf16>
    %cst_24 = arith.constant dense<0.000000e+00> : vector<64x64xf32>
    %72 = tpu.matmul %69, %70, %cst_24 {dimension_numbers = #tpu.dot_dimension_numbers<[1], [0], [0], [1], [0, 0, 1, 1], [], []>} : vector<64x16xbf16>, vector<16x64xbf16>, vector<64x64xf32> -> vector<64x64xf32>
    %73 = arith.addf %72, %2 : vector<64x64xf32>
    %cst_25 = arith.constant dense<0xFF800000> : vector<64xf32>
    %74 = vector.multi_reduction <maximumf>, %73, %cst_25 [1] : vector<64x64xf32> to vector<64xf32>
    %75 = vector.shape_cast %74 : vector<64xf32> to vector<64x1xf32>
    %76 = vector.broadcast %75 : vector<64x1xf32> to vector<64x64xf32>
    %77 = arith.subf %73, %76 : vector<64x64xf32>
    %78 = math.exp %77 : vector<64x64xf32>
    %cst_26 = arith.constant dense<0.000000e+00> : vector<64xf32>
    %79 = vector.multi_reduction <add>, %78, %cst_26 [1] : vector<64x64xf32> to vector<64xf32>
    %80 = vector.shape_cast %79 : vector<64xf32> to vector<64x1xf32>
    %81 = arith.truncf %78 : vector<64x64xf32> to vector<64x64xbf16>
    %cst_27 = arith.constant dense<0.000000e+00> : vector<64x16xf32>
    %82 = tpu.matmul %81, %71, %cst_27 {dimension_numbers = #tpu.dot_dimension_numbers<[1], [0], [0], [1], [0, 0, 1, 1], [], []>} : vector<64x64xbf16>, vector<64x16xbf16>, vector<64x16xf32> -> vector<64x16xf32>
    %83 = tpu.reciprocal %80 {approx = true} : vector<64x1xf32> -> vector<64x1xf32>
    %84 = vector.broadcast %83 : vector<64x1xf32> to vector<64x16xf32>
    %85 = arith.mulf %82, %84 : vector<64x16xf32>
    %86 = arith.truncf %85 : vector<64x16xf32> to vector<64x16xbf16>
    %87 = vector.extract_strided_slice %16 {offsets = [32, 0], sizes = [16, 32], strides = [1, 1]} : vector<64x32xbf16> to vector<16x32xbf16>
    %cst_28 = arith.constant dense<0.000000e+00> : vector<64x32xf32>
    %88 = tpu.matmul %86, %87, %cst_28 {dimension_numbers = #tpu.dot_dimension_numbers<[1], [0], [0], [1], [0, 0, 1, 1], [], []>} : vector<64x16xbf16>, vector<16x32xbf16>, vector<64x32xf32> -> vector<64x32xf32>
    %89 = arith.addf %68, %88 : vector<64x32xf32>
    %90 = vector.extract_strided_slice %9 {offsets = [0, 48], sizes = [64, 16], strides = [1, 1]} : vector<64x64xbf16> to vector<64x16xbf16>
    %91 = vector.extract_strided_slice %12 {offsets = [48, 0], sizes = [16, 64], strides = [1, 1]} : vector<64x64xbf16> to vector<16x64xbf16>
    %92 = vector.extract_strided_slice %14 {offsets = [0, 48], sizes = [64, 16], strides = [1, 1]} : vector<64x64xbf16> to vector<64x16xbf16>
    %cst_29 = arith.constant dense<0.000000e+00> : vector<64x64xf32>
    %93 = tpu.matmul %90, %91, %cst_29 {dimension_numbers = #tpu.dot_dimension_numbers<[1], [0], [0], [1], [0, 0, 1, 1], [], []>} : vector<64x16xbf16>, vector<16x64xbf16>, vector<64x64xf32> -> vector<64x64xf32>
    %94 = arith.addf %93, %2 : vector<64x64xf32>
    %cst_30 = arith.constant dense<0xFF800000> : vector<64xf32>
    %95 = vector.multi_reduction <maximumf>, %94, %cst_30 [1] : vector<64x64xf32> to vector<64xf32>
    %96 = vector.shape_cast %95 : vector<64xf32> to vector<64x1xf32>
    %97 = vector.broadcast %96 : vector<64x1xf32> to vector<64x64xf32>
    %98 = arith.subf %94, %97 : vector<64x64xf32>
    %99 = math.exp %98 : vector<64x64xf32>
    %cst_31 = arith.constant dense<0.000000e+00> : vector<64xf32>
    %100 = vector.multi_reduction <add>, %99, %cst_31 [1] : vector<64x64xf32> to vector<64xf32>
    %101 = vector.shape_cast %100 : vector<64xf32> to vector<64x1xf32>
    %102 = arith.truncf %99 : vector<64x64xf32> to vector<64x64xbf16>
    %cst_32 = arith.constant dense<0.000000e+00> : vector<64x16xf32>
    %103 = tpu.matmul %102, %92, %cst_32 {dimension_numbers = #tpu.dot_dimension_numbers<[1], [0], [0], [1], [0, 0, 1, 1], [], []>} : vector<64x64xbf16>, vector<64x16xbf16>, vector<64x16xf32> -> vector<64x16xf32>
    %104 = tpu.reciprocal %101 {approx = true} : vector<64x1xf32> -> vector<64x1xf32>
    %105 = vector.broadcast %104 : vector<64x1xf32> to vector<64x16xf32>
    %106 = arith.mulf %103, %105 : vector<64x16xf32>
    %107 = arith.truncf %106 : vector<64x16xf32> to vector<64x16xbf16>
    %108 = vector.extract_strided_slice %16 {offsets = [48, 0], sizes = [16, 32], strides = [1, 1]} : vector<64x32xbf16> to vector<16x32xbf16>
    %cst_33 = arith.constant dense<0.000000e+00> : vector<64x32xf32>
    %109 = tpu.matmul %107, %108, %cst_33 {dimension_numbers = #tpu.dot_dimension_numbers<[1], [0], [0], [1], [0, 0, 1, 1], [], []>} : vector<64x16xbf16>, vector<16x32xbf16>, vector<64x32xf32> -> vector<64x32xf32>
    %110 = arith.addf %89, %109 : vector<64x32xf32>
    %111 = vector.broadcast %23 : vector<1x32xf32> to vector<64x32xf32>
    %112 = arith.addf %110, %111 : vector<64x32xf32>
    %113 = vector.broadcast %24 : vector<1x32xf32> to vector<64x32xf32>
    %114 = arith.mulf %113, %112 : vector<64x32xf32>
    %115 = arith.addf %0, %114 : vector<64x32xf32>
    %116 = arith.truncf %115 : vector<64x32xf32> to vector<64x32xbf16>
    %c0_34 = arith.constant 0 : index
    %c0_35 = arith.constant 0 : index
    %117 = vector.load %arg4[%c0_34, %c0_35] : memref<32x64xbf16, #tpu.memory_space<vmem>>, vector<32x64xbf16>
    %cst_36 = arith.constant dense<0.000000e+00> : vector<64x64xf32>
    %118 = tpu.matmul %116, %117, %cst_36 {dimension_numbers = #tpu.dot_dimension_numbers<[1], [0], [0], [1], [0, 0, 1, 1], [], []>} : vector<64x32xbf16>, vector<32x64xbf16>, vector<64x64xf32> -> vector<64x64xf32>
    %119 = vector.broadcast %20 : vector<1x64xf32> to vector<64x64xf32>
    %120 = arith.addf %118, %119 : vector<64x64xf32>
    %cst_37 = arith.constant 0.000000e+00 : f32
    %121 = vector.broadcast %cst_37 : f32 to vector<64x64xf32>
    %122 = arith.maximumf %120, %121 : vector<64x64xf32>
    %123 = arith.truncf %122 : vector<64x64xf32> to vector<64x64xbf16>
    %cst_38 = arith.constant dense<0.000000e+00> : vector<64x64xf32>
    %124 = tpu.matmul %123, %17, %cst_38 {dimension_numbers = #tpu.dot_dimension_numbers<[1], [0], [0], [1], [0, 0, 1, 1], [], []>} : vector<64x64xbf16>, vector<64x64xbf16>, vector<64x64xf32> -> vector<64x64xf32>
    %125 = vector.broadcast %21 : vector<1x64xf32> to vector<64x64xf32>
    %126 = arith.addf %124, %125 : vector<64x64xf32>
    %cst_39 = arith.constant 0.000000e+00 : f32
    %127 = vector.broadcast %cst_39 : f32 to vector<64x64xf32>
    %128 = arith.maximumf %126, %127 : vector<64x64xf32>
    %129 = arith.truncf %128 : vector<64x64xf32> to vector<64x64xbf16>
    %cst_40 = arith.constant dense<0.000000e+00> : vector<64x32xf32>
    %130 = tpu.matmul %129, %18, %cst_40 {dimension_numbers = #tpu.dot_dimension_numbers<[1], [0], [0], [1], [0, 0, 1, 1], [], []>} : vector<64x64xbf16>, vector<64x32xbf16>, vector<64x32xf32> -> vector<64x32xf32>
    %131 = vector.broadcast %25 : vector<1x32xf32> to vector<64x32xf32>
    %132 = arith.addf %130, %131 : vector<64x32xf32>
    %133 = vector.broadcast %24 : vector<1x32xf32> to vector<64x32xf32>
    %134 = arith.mulf %133, %132 : vector<64x32xf32>
    %135 = arith.addf %115, %134 : vector<64x32xf32>
    %c0_41 = arith.constant 0 : index
    %c0_42 = arith.constant 0 : index
    %136 = vector.load %arg9[%c0_41, %c0_42] : memref<64x32xf32, #tpu.memory_space<vmem>>, vector<64x32xf32>
    tpu.vector_store %arg9[%c0_41, %c0_42], %135 {strides = array<i32>} : memref<64x32xf32, #tpu.memory_space<vmem>>, vector<64x32xf32>,
    return
  }
  func.func @transform_0(%arg0: i32) -> (i32, i32) {
    %c0_i32 = arith.constant 0 : i32
    %c0_i32_0 = arith.constant 0 : i32
    %c0_i32_1 = arith.constant 0 : i32
    return %c0_i32, %c0_i32_0 : i32, i32
  }
  func.func @transform_1(%arg0: i32) -> (i32, i32) {
    %c0_i32 = arith.constant 0 : i32
    %c0_i32_0 = arith.constant 0 : i32
    %c0_i32_1 = arith.constant 0 : i32
    return %c0_i32, %c0_i32_0 : i32, i32
  }
  func.func @transform_2(%arg0: i32) -> (i32, i32) {
    %c0_i32 = arith.constant 0 : i32
    %c0_i32_0 = arith.constant 0 : i32
    %c0_i32_1 = arith.constant 0 : i32
    return %c0_i32, %c0_i32_0 : i32, i32
  }
  func.func @transform_3(%arg0: i32) -> (i32, i32) {
    %c0_i32 = arith.constant 0 : i32
    %c0_i32_0 = arith.constant 0 : i32
    %c0_i32_1 = arith.constant 0 : i32
    return %c0_i32, %c0_i32_0 : i32, i32
  }
  func.func @transform_4(%arg0: i32) -> (i32, i32) {
    %c0_i32 = arith.constant 0 : i32
    %c0_i32_0 = arith.constant 0 : i32
    %c0_i32_1 = arith.constant 0 : i32
    return %c0_i32, %c0_i32_0 : i32, i32
  }
  func.func @transform_5(%arg0: i32) -> (i32, i32) {
    %c0_i32 = arith.constant 0 : i32
    %c0_i32_0 = arith.constant 0 : i32
    %c0_i32_1 = arith.constant 0 : i32
    return %c0_i32, %c0_i32_0 : i32, i32
  }
  func.func @transform_6(%arg0: i32) -> (i32, i32) {
    %c0_i32 = arith.constant 0 : i32
    %c0_i32_0 = arith.constant 0 : i32
    %c0_i32_1 = arith.constant 0 : i32
    return %c0_i32, %c0_i32_0 : i32, i32
  }
  func.func @transform_7(%arg0: i32) -> (i32, i32) {
    %c0_i32 = arith.constant 0 : i32
    %c0_i32_0 = arith.constant 0 : i32
    %c0_i32_1 = arith.constant 0 : i32
    return %c0_i32, %c0_i32_0 : i32, i32
  }
  func.func @transform_8(%arg0: i32) -> (i32, i32) {
    %c0_i32 = arith.constant 0 : i32
    %c0_i32_0 = arith.constant 0 : i32
    %c0_i32_1 = arith.constant 0 : i32
    return %c0_i32, %c0_i32_0 : i32, i32
  }
}

</mosaic_0001>

<bundles_post_ra>
// kernel: rezero_transformer_block.1
= control target key start
LH: loop header
LB: loop body
LE: loop exit
PB: predicated region body
PF: predicated region fallthrough
CT: control target
= control target key end

     0   :  { %v2721_v1 = vmov 0   ;;  %vm86_vm0 = vcmask 261120   ;;  %v56_v17 = vlaneseq  ;;  %s2722_s30 = smov 64   ;;  %vm258_vm1 = vcmask 130048   ;;  %s2723_s23 = smov 112   ;;  %s3473_s2 = inlined_call_operand.vmem [shape: bf16[32,192], index: 2, kind: input, shape index: {}]   ;;  %s3474_s0 = inlined_call_operand.vmem [shape: f32[64,32], index: 0, kind: input, shape index: {}]   ;;  %s3475_s5 = inlined_call_operand.vmem [shape: f32[1,192], index: 5, kind: input, shape index: {}]   ;;  %s3476_s1 = inlined_call_operand.vmem [shape: f32[64,64], index: 1, kind: input, shape index: {}]   ;;  %s3477_s4 = inlined_call_operand.vmem [shape: bf16[64,128], index: 4, kind: input, shape index: {}]   ;;  %s3478_s7 = inlined_call_operand.vmem [shape: f32[1,96], index: 7, kind: input, shape index: {}]   ;;  %s3479_s3 = inlined_call_operand.vmem [shape: bf16[32,64], index: 3, kind: input, shape index: {}]   ;;  %s3480_s6 = inlined_call_operand.vmem [shape: f32[1,128], index: 6, kind: input, shape index: {}]   ;;  %s3481_s8 = inlined_call_operand.vmem [shape: f32[64,32], index: 8, kind: output, shape index: {}]  }
   0x1   :  { %v2564_v0 = vld [vmem:[%s3473_s2 + $0x4] ss:$8 sps:$4 sm:$0xff]   ;;  %131 = vmatprep.mubr.bf16.mxu0 %v2721_v1  ;;  %v2566_v2 = vld [vmem:[%s3473_s2] ss:$8 sps:$4 sm:$0xff]   ;;  %v2567_v3 = vld [vmem:[%s3473_s2 + $0x14] ss:$8 sps:$4 sm:$0xff]  }
   0x2   :  { %99 = vmatprep.subr.bf16.mxu0 %v2564_v0  ;;  %v2569_v4 = vld [vmem:[%s3473_s2 + $0x10] ss:$8 sps:$4 sm:$0xff]   ;;  %v30_v5 = vld [vmem:[%s3474_s0] sm:$0xff]  ;;  %v31_v6 = vld [vmem:[%s3474_s0 + $0x8] sm:$0xff]  ;;  %v57_v18 = vshrl.u32 %v56_v17, 7  ;;  %vm336_vm2 = vcmask 523264  }
   0x3   :  { %100 = vmatpush1.bf16.msra.mxu0 %v2566_v2  ;;  %v38_v7 = vpack.c.bf16 %v31_v6, %v30_v5  ;;  %v32_v8 = vld [vmem:[%s3474_s0 + $0x10] sm:$0xff]  ;;  %v33_v9 = vld [vmem:[%s3474_s0 + $0x18] sm:$0xff]  ;;  %v34_v11 = vld [vmem:[%s3474_s0 + $0x20] sm:$0xff]  ;;  %s2724_s26 = smov 96   ;;  %s2725_s27 = smov 80  }
   0x4   :  { %101 = vmatprep.subr.bf16.mxu0 %v2567_v3  ;;  %v39_v10 = vpack.c.bf16 %v33_v9, %v32_v8  ;;  %v35_v12 = vld [vmem:[%s3474_s0 + $0x28] sm:$0xff]  ;;  %v36_v14 = vld [vmem:[%s3474_s0 + $0x30] sm:$0xff]  ;;  %v37_v15 = vld [vmem:[%s3474_s0 + $0x38] sm:$0xff]  ;;  %v58_v19 = vsub.s32 0, %v57_v18  ;;  %v62_v21 = vsub.s32 1, %v57_v18  ;;  %s2726_s29 = smov 32  }
   0x5   :  { %v40_v13 = vpack.c.bf16 %v35_v12, %v34_v11  ;;  %v41_v16 = vpack.c.bf16 %v37_v15, %v36_v14  ;;  %v54_v20 = vld [vmem:[%s3475_s5] sm:$0x3]  ;;  %v2861_v14 = vld [vmem:[%s3476_s1 + $0x10] sm:$0xff] }
   0x6   :  { %v59_v22 = vrot.slane %v54_v20, %v58_v19  ;;  %v63_v24 = vrot.slane %v54_v20, %v62_v21 }
   0x7   :  { %102 = vmatpush1.bf16.msra.mxu0 %v2569_v4 }
   0xa   :  { %2177 = vmatmul.mubr.msk.bf16.vlgmr.msra.gmra.mrb[0].mxu0 %vm86_vm0, %v38_v7 }
   0xb   :  { %141 = vmatprep.mubr.bf16.mxu0 %v2721_v1 }
  0x12   :  { %2178 = vmatmul.mubr.msk.bf16.gmra.mrb[4].mxu0 %vm86_vm0, %v39_v10 }
  0x13   :  { %151 = vmatprep.mubr.bf16.mxu0 %v2721_v1 }
  0x1a   :  { %2179 = vmatmul.mubr.msk.bf16.gmra.mrb[8].mxu0 %vm86_vm0, %v40_v13 }
  0x1b   :  { %161 = vmatprep.mubr.bf16.mxu0 %v2721_v1 }
  0x22   :  { %2180 = vmatmul.mubr.msk.bf16.gmra.mrb[12].mxu0 %vm86_vm0, %v41_v16  ;;  %v2866_v16 = vld [vmem:[%s3476_s1] sm:$0xff] }
  0xdd   :  { %v133_v23 = vpop.f32.mrb[0].mxu0 }
  0xde   :  { %v134_v25 = vadd.f32 %v133_v23, %v59_v22  ;;  %v135_v26 = vpop.f32.mrb[1].mxu0  ;;  %v2874_v23 = vld [vmem:[%s3476_s1 + $0x18] sm:$0xff] }
  0xdf   :  { %v137_v27 = vpop.f32.mrb[2].mxu0  ;;  %v136_v30 = vadd.f32 %v135_v26, %v63_v24  ;;  %v2881_v26 = vld [vmem:[%s3476_s1 + $0x8] sm:$0xff] }
  0xe0   :  { %v138_v28 = vadd.f32 %v137_v27, %v59_v22  ;;  %v139_v29 = vpop.f32.mrb[3].mxu0  ;;  %184 = vrot.lane.b32.xlu0 %v134_v25, %s2722_s30 }
  0xe1   :  { %v140_v31 = vadd.f32 %v139_v29, %v63_v24 }
  0xe2   :  { %v2816_v32 = vpack.c.bf16 %v138_v28, %v134_v25 }
  0xe3   :  { %v2818_v33 = vpack.c.bf16 %v140_v31, %v136_v30 }
  0xe4   :  { %186 = vrot.lane.b32.xlu0 %v138_v28, %s2722_s30  ;;  %2345 = vmatprep.mubr.msk.bf16.mxu1 %vm258_vm1, %v2816_v32  ;;  %v2886_v28 = vld [vmem:[%s3476_s1 + $0x38] sm:$0xff] }
  0xe5   :  { %v143_v34 = vpop.f32.mrb[4].mxu0 }
  0xe6   :  { %v144_v35 = vadd.f32 %v143_v34, %v59_v22  ;;  %v145_v36 = vpop.f32.mrb[5].mxu0 }
  0xe7   :  { %v147_v37 = vpop.f32.mrb[6].mxu0  ;;  %v146_v40 = vadd.f32 %v145_v36, %v63_v24 }
  0xe8   :  { %v148_v38 = vadd.f32 %v147_v37, %v59_v22  ;;  %v149_v39 = vpop.f32.mrb[7].mxu0  ;;  %188 = vrot.lane.b32.xlu1 %v144_v35, %s2722_s30  ;;  %v2894_v37 = vld [vmem:[%s3476_s1 + $0x30] sm:$0xff] }
  0xe9   :  { %v150_v41 = vadd.f32 %v149_v39, %v63_v24 }
  0xea   :  { %v2824_v42 = vpack.c.bf16 %v148_v38, %v144_v35 }
  0xeb   :  { %v2826_v43 = vpack.c.bf16 %v150_v41, %v146_v40  ;;  %v2902_v41 = vld [vmem:[%s3476_s1 + $0x20] sm:$0xff] }
  0xec   :  { %190 = vrot.lane.b32.xlu1 %v148_v38, %s2722_s30 }
  0xed   :  { %v153_v44 = vpop.f32.mrb[8].mxu0 }
  0xee   :  { %v154_v45 = vadd.f32 %v153_v44, %v59_v22  ;;  %v155_v46 = vpop.f32.mrb[9].mxu0 }
  0xef   :  { %v157_v47 = vpop.f32.mrb[10].mxu0  ;;  %v156_v50 = vadd.f32 %v155_v46, %v63_v24  ;;  %v2909_v46 = vld [vmem:[%s3476_s1 + $0x28] sm:$0xff] }
  0xf0   :  { %v158_v48 = vadd.f32 %v157_v47, %v59_v22  ;;  %v159_v49 = vpop.f32.mrb[11].mxu0  ;;  %192 = vrot.lane.b32.xlu0 %v154_v45, %s2722_s30 }
  0xf1   :  { %v160_v51 = vadd.f32 %v159_v49, %v63_v24 }
  0xf2   :  { %v2830_v52 = vpack.c.bf16 %v158_v48, %v154_v45  ;;  %194 = vrot.lane.b32.xlu1 %v158_v48, %s2722_s30 }
  0xf3   :  { %v2833_v53 = vpack.c.bf16 %v160_v51, %v156_v50 }
  0xf5   :  { %v163_v54 = vpop.f32.mrb[12].mxu0 }
  0xf6   :  { %v164_v55 = vadd.f32 %v163_v54, %v59_v22  ;;  %v165_v56 = vpop.f32.mrb[13].mxu0 }
  0xf7   :  { %v167_v57 = vpop.f32.mrb[14].mxu0  ;;  %v166_v60 = vadd.f32 %v165_v56, %v63_v24 }
  0xf8   :  { %v168_v58 = vadd.f32 %v167_v57, %v59_v22  ;;  %v169_v59 = vpop.f32.mrb[15].mxu0  ;;  %196 = vrot.lane.b32.xlu0 %v164_v55, %s2722_s30 }
  0xf9   :  { %v170_v61 = vadd.f32 %v169_v59, %v63_v24 }
  0xfa   :  { %v2836_v62 = vpack.c.bf16 %v168_v58, %v164_v55  ;;  %198 = vrot.lane.b32.xlu1 %v168_v58, %s2722_s30 }
  0xfb   :  { %v2839_v63 = vpack.c.bf16 %v170_v61, %v166_v60 }
 0x152   :  { %v185_v0 = vpop.permute.xlu0 %184 }
 0x153   :  { %208 = vxpose.xlu0.b32.start [1/8] (short) (narrow) %v185_v0, 64 }
 0x156   :  { %v187_v1 = vpop.permute.xlu0 %186 }
 0x157   :  { %209 = vxpose.xlu0.b32.cont [2/8] (short) (narrow) %v187_v1, 64 }
 0x15a   :  { %v189_v2 = vpop.permute.xlu1 %188 }
 0x15b   :  { %210 = vxpose.xlu0.b32.cont [3/8] (short) (narrow) %v189_v2, 64 }
 0x15e   :  { %v191_v3 = vpop.permute.xlu1 %190 }
 0x15f   :  { %211 = vxpose.xlu0.b32.cont [4/8] (short) (narrow) %v191_v3, 64 }
 0x162   :  { %v193_v4 = vpop.permute.xlu0 %192 }
 0x163   :  { %212 = vxpose.xlu0.b32.cont [5/8] (short) (narrow) %v193_v4, 64 }
 0x164   :  { %v195_v5 = vpop.permute.xlu1 %194 }
 0x167   :  { %213 = vxpose.xlu0.b32.cont [6/8] (short) (narrow) %v195_v5, 64 }
 0x16a   :  { %v197_v6 = vpop.permute.xlu0 %196 }
 0x16b   :  { %214 = vxpose.xlu0.b32.cont [7/8] (short) (narrow) %v197_v6, 64 }
 0x16c   :  { %v199_v7 = vpop.permute.xlu1 %198 }
 0x16f   :  { %215 = vxpose.xlu0.b32.end [8/8] (short) (narrow) %v199_v7, 64 }
 0x1d3   :  { %v224_v8 = vpop.trf.xlu0 }
 0x1d7   :  { %v225_v9 = vpop.trf.xlu0 }
 0x1d8   :  { %v240_v10 = vpack.c.bf16 %v225_v9, %v224_v8 }
 0x1da   :  { %2343 = vmatprep.subr.bf16.mxu1 %v240_v10 }
 0x1db   :  { %2344 = vmatpush3.bf16.msra.mxu1 %v240_v10  ;;  %v226_v11 = vpop.trf.xlu0 }
 0x1dc   :  { %2353 = vmatprep.subr.bf16.mxu1 %v2818_v33 }
 0x1de   :  { %2346 = vmatmul.mubr.msk.bf16.vlgmr.msra.gmra.mrb[0].mxu1 %vm258_vm1, %v2824_v42 }
 0x1df   :  { %2349 = vmatprep.mubr.msk.bf16.mxu1 %vm258_vm1, %v2830_v52  ;;  %2354 = vmatpush3.bf16.msra.mxu1 %v2818_v33  ;;  %v227_v12 = vpop.trf.xlu0 }
 0x1e0   :  { %2355 = vmatprep.subr.bf16.mxu1 %v2826_v43  ;;  %v2855_v13 = vpack.c.bf16 %v227_v12, %v226_v11 }
 0x1e3   :  { %2356 = vmatpush3.bf16.msra.mxu1 %v2826_v43  ;;  %v2924_v50 = vpop.trf.xlu0 }
 0x1e4   :  { %2357 = vmatprep.subr.bf16.mxu1 %v2833_v53 }
 0x1e6   :  { %2350 = vmatmul.mubr.msk.bf16.gmra.mrb[4].mxu1 %vm258_vm1, %v2836_v62 }
 0x1e7   :  { %2358 = vmatpush3.bf16.msra.mxu1 %v2833_v53  ;;  %v2926_v51 = vpop.trf.xlu0 }
 0x1e8   :  { %2359 = vmatprep.subr.bf16.mxu1 %v2839_v63 }
 0x1eb   :  { %2360 = vmatpush3.bf16.msra.mxu1 %v2839_v63  ;;  %v2928_v54 = vpop.trf.xlu0 }
 0x1ec   :  { %2369 = vmatprep.subr.bf16.mxu1 %v2855_v13 }
 0x1ef   :  { %v2930_v57 = vpop.trf.xlu0 }
 0x2b1   :  { %v2347_v15 = vpop.f32.mrb[0].mxu1 }
 0x2b2   :  { %v314_v17 = vadd.f32 %v2347_v15, %v2861_v14  ;;  %v305_v18 = vpop.f32.mrb[1].mxu1 }
 0x2b3   :  { %v2348_v19 = vpop.f32.mrb[2].mxu1  ;;  %v306_v20 = vadd.f32 %v305_v18, %v2866_v16 }
 0x2b4   :  { %v308_v21 = vpop.f32.mrb[3].mxu1  ;;  %v343_v22 = vsel %vm336_vm2, %v314_v17, -inf  ;;  %v317_v24 = vadd.f32 %v2348_v19, %v2874_v23 }
 0x2b5   :  { %344 = vmax.xlane.f32.xlu1 %v343_v22  ;;  %v337_v25 = vsel %vm336_vm2, %v306_v20, -inf  ;;  %v309_v31 = vadd.f32 %v308_v21, %v2881_v26 }
 0x2b6   :  { %v346_v36 = vsel %vm336_vm2, %v317_v24, -inf }
 0x2b7   :  { %v340_v40 = vsel %vm336_vm2, %v309_v31, -inf }
 0x2b9   :  { %v2351_v27 = vpop.f32.mrb[4].mxu1  ;;  %338 = vmax.xlane.f32.xlu1 %v337_v25 }
 0x2ba   :  { %v321_v29 = vpop.f32.mrb[5].mxu1  ;;  %v330_v39 = vadd.f32 %v2351_v27, %v2894_v37 }
 0x2bb   :  { %v2352_v30 = vpop.f32.mrb[6].mxu1  ;;  %v322_v44 = vadd.f32 %v321_v29, %v2902_v41 }
 0x2bc   :  { %v333_v34 = vadd.f32 %v2352_v30, %v2886_v28  ;;  %v324_v35 = vpop.f32.mrb[7].mxu1  ;;  %v355_v45 = vsel %vm336_vm2, %v330_v39, -inf }
 0x2bd   :  { %347 = vmax.xlane.f32.xlu1 %v346_v36  ;;  %v325_v47 = vadd.f32 %v324_v35, %v2909_v46  ;;  %v349_v48 = vsel %vm336_vm2, %v322_v44, -inf }
 0x2be   :  { %v358_v38 = vsel %vm336_vm2, %v333_v34, -inf }
 0x2bf   :  { %359 = vmax.xlane.f32.xlu0 %v358_v38  ;;  %v352_v49 = vsel %vm336_vm2, %v325_v47, -inf }
 0x2c1   :  { %341 = vmax.xlane.f32.xlu1 %v340_v40 }
 0x2c5   :  { %356 = vmax.xlane.f32.xlu1 %v355_v45 }
 0x2c9   :  { %350 = vmax.xlane.f32.xlu1 %v349_v48 }
 0x2cd   :  { %353 = vmax.xlane.f32.xlu1 %v352_v49 }
 0x2d5   :  { %679 = vrot.lane.b32.xlu0 %v2818_v33, %s2723_s23 }
 0x2de   :  { %514 = vrot.lane.b32.xlu1 %v2816_v32, %s2723_s23 }
 0x2e2   :  { %516 = vrot.lane.b32.xlu1 %v2824_v42, %s2723_s23 }
 0x2e6   :  { %518 = vrot.lane.b32.xlu1 %v2830_v52, %s2723_s23 }
 0x2ea   :  { %520 = vrot.lane.b32.xlu1 %v2836_v62, %s2723_s23 }
 0x342   :  { %v345_v55 = vpop.xlane.xlu1 %344 }
 0x343   :  { %v363_v61 = vsub.f32 %v314_v17, %v345_v55 }
 0x345   :  { %v373_v5 = vmul.f32 1.442695, %v363_v61 }
 0x346   :  { %v339_v56 = vpop.xlane.xlu1 %338 }
 0x347   :  { %v361_v58 = vsub.f32 %v306_v20, %v339_v56 }
 0x349   :  { %v369_v1 = vmul.f32 1.442695, %v361_v58 }
 0x34a   :  { %v348_v59 = vpop.xlane.xlu1 %347 }
 0x34b   :  { %v364_v60 = vsub.f32 %v317_v24, %v348_v59  ;;  %2576 = vpow2.f32 %v369_v1 }
 0x34c   :  { %v360_v0 = vpop.xlane.xlu0 %359 }
 0x34d   :  { %v375_v2 = vmul.f32 1.442695, %v364_v60  ;;  %v368_v12 = vsub.f32 %v333_v34, %v360_v0 }
 0x34e   :  { %v342_v3 = vpop.xlane.xlu1 %341 }
 0x34f   :  { %v362_v4 = vsub.f32 %v309_v31, %v342_v3  ;;  %2578 = vpow2.f32 %v375_v2  ;;  %v383_v22 = vmul.f32 1.442695, %v368_v12 }
 0x350   :  { %v680_v6 = vpop.permute.xlu0 %679 }
 0x351   :  { %v371_v7 = vmul.f32 1.442695, %v362_v4  ;;  %2379 = vmatprep.subr.bf16.mxu0 %v680_v6 }
 0x352   :  { %2380 = vmatpush3.bf16.msra.mxu0 %v680_v6  ;;  %v357_v8 = vpop.xlane.xlu1 %356 }
 0x353   :  { %2580 = vpow2.f32 %v371_v7  ;;  %v367_v9 = vsub.f32 %v330_v39, %v357_v8 }
 0x354   :  { %2582 = vpow2.f32 %v373_v5 }
 0x355   :  { %v381_v15 = vmul.f32 1.442695, %v367_v9  ;;  %v2932_v19 = vpop.eup %2576 }
 0x356   :  { %v351_v10 = vpop.xlane.xlu1 %350 }
 0x357   :  { %v365_v11 = vsub.f32 %v322_v44, %v351_v10  ;;  %2584 = vpow2.f32 %v381_v15 }
 0x359   :  { %v377_v17 = vmul.f32 1.442695, %v365_v11  ;;  %v2934_v21 = vpop.eup %2578 }
 0x35a   :  { %v354_v18 = vpop.xlane.xlu1 %353 }
 0x35b   :  { %v366_v20 = vsub.f32 %v325_v47, %v354_v18  ;;  %2586 = vpow2.f32 %v377_v17 }
 0x35d   :  { %v2936_v24 = vpop.eup %2580  ;;  %v379_v25 = vmul.f32 1.442695, %v366_v20 }
 0x35e   :  { %v2938_v27 = vpop.eup %2582  ;;  %v409_v29 = vpack.c.bf16 %v2936_v24, %v2932_v19  ;;  %v515_v36 = vpop.permute.xlu1 %514 }
 0x35f   :  { %v410_v30 = vpack.c.bf16 %v2934_v21, %v2938_v27  ;;  %2588 = vpow2.f32 %v379_v25 }
 0x360   :  { %2590 = vpow2.f32 %v383_v22  ;;  %2361 = vmatprep.mubr.msk.bf16.mxu1 %vm336_vm2, %v409_v29  ;;  %v2570_v29 = vld [vmem:[%s3477_s4 + $0x8] sm:$0xff]  }
 0x361   :  { %2362 = vmatmul.mubr.msk.bf16.vlgmr.msra.gmra.mrb[8].mxu1 %vm336_vm2, %v410_v30  ;;  %v2947_v31 = vpop.eup %2584 }
 0x362   :  { %2370 = vmatpush3.bf16.msra.mxu1 %v2855_v13  ;;  %v517_v13 = vpop.permute.xlu1 %516 }
 0x363   :  { %2531 = vmatprep.subr.bf16.mxu1 %v2570_v29 }
 0x365   :  { %v2949_v34 = vpop.eup %2586 }
 0x366   :  { %v519_v44 = vpop.permute.xlu1 %518 }
 0x369   :  { %v2951_v35 = vpop.eup %2588 }
 0x36a   :  { %v2953_v38 = vpop.eup %2590  ;;  %v411_v39 = vpack.c.bf16 %v2951_v35, %v2949_v34  ;;  %v521_v45 = vpop.permute.xlu1 %520 }
 0x36b   :  { %v412_v40 = vpack.c.bf16 %v2953_v38, %v2947_v31 }
 0x36c   :  { %2365 = vmatprep.mubr.msk.bf16.mxu1 %vm336_vm2, %v411_v39 }
 0x36d   :  { %2366 = vmatmul.mubr.msk.bf16.gmra.mrb[12].mxu1 %vm336_vm2, %v412_v40 }
 0x36e   :  { %2371 = vmatprep.mubr.msk.bf16.mxu1 %vm258_vm1, %v515_v36 }
 0x375   :  { %2372 = vmatmul.mubr.msk.bf16.vlgmr.msra.gmra.mrb[16].mxu1 %vm258_vm1, %v517_v13 }
 0x376   :  { %2375 = vmatprep.mubr.msk.bf16.mxu1 %vm258_vm1, %v519_v44  ;;  %2532 = vmatpush3.bf16.msra.mxu1 %v2570_v29 }
 0x37d   :  { %2376 = vmatmul.mubr.msk.bf16.gmra.mrb[20].mxu1 %vm258_vm1, %v521_v45 }
 0x434   :  { %v2965_v47 = vpop.f32.mrb[8].mxu1 }
 0x435   :  { %v2967_v48 = vpop.f32.mrb[9].mxu1 }
 0x436   :  { %v2969_v49 = vpop.f32.mrb[10].mxu1 }
 0x437   :  { %v2971_v55 = vpop.f32.mrb[11].mxu1 }
 0x440   :  { %v2973_v56 = vpop.f32.mrb[12].mxu1 }
 0x441   :  { %v2975_v58 = vpop.f32.mrb[13].mxu1 }
 0x442   :  { %v2977_v59 = vpop.f32.mrb[14].mxu1 }
 0x443   :  { %v2979_v60 = vpop.f32.mrb[15].mxu1 }
 0x448   :  { %v2373_v61 = vpop.f32.mrb[16].mxu1 }
 0x449   :  { %v577_v0 = vadd.f32 %v2373_v61, %v2861_v14  ;;  %v568_v1 = vpop.f32.mrb[17].mxu1 }
 0x44a   :  { %v569_v2 = vadd.f32 %v568_v1, %v2866_v16  ;;  %v2374_v3 = vpop.f32.mrb[18].mxu1 }
 0x44b   :  { %v571_v4 = vpop.f32.mrb[19].mxu1  ;;  %v605_v5 = vsel %vm336_vm2, %v577_v0, -inf  ;;  %v580_v11 = vadd.f32 %v2374_v3, %v2874_v23 }
 0x44c   :  { %606 = vmax.xlane.f32.xlu0 %v605_v5  ;;  %v599_v6 = vsel %vm336_vm2, %v569_v2, -inf  ;;  %v572_v15 = vadd.f32 %v571_v4, %v2881_v26 }
 0x44d   :  { %600 = vmax.xlane.f32.xlu1 %v599_v6  ;;  %v608_v17 = vsel %vm336_vm2, %v580_v11, -inf }
 0x44e   :  { %v602_v22 = vsel %vm336_vm2, %v572_v15, -inf }
 0x450   :  { %v2377_v7 = vpop.f32.mrb[20].mxu1 }
 0x451   :  { %v584_v8 = vpop.f32.mrb[21].mxu1  ;;  %v3012_v36 = vadd.f32 %v2377_v7, %v2894_v37 }
 0x452   :  { %v2378_v9 = vpop.f32.mrb[22].mxu1  ;;  %v2991_v12 = vadd.f32 %v584_v8, %v2902_v41 }
 0x453   :  { %v587_v10 = vpop.f32.mrb[23].mxu1  ;;  %v2996_v18 = vadd.f32 %v2378_v9, %v2886_v28  ;;  %v617_v40 = vsel %vm336_vm2, %v3012_v36, -inf }
 0x454   :  { %v611_v20 = vsel %vm336_vm2, %v2991_v12, -inf  ;;  %v3009_v30 = vadd.f32 %v587_v10, %v2909_v46 }
 0x455   :  { %v620_v25 = vsel %vm336_vm2, %v2996_v18, -inf }
 0x456   :  { %v614_v39 = vsel %vm336_vm2, %v3009_v30, -inf }
 0x45e   :  { %681 = vrot.lane.b32.xlu1 %v2826_v43, %s2723_s23 }
 0x462   :  { %683 = vrot.lane.b32.xlu0 %v2833_v53, %s2723_s23 }
 0x481   :  { %609 = vmax.xlane.f32.xlu0 %v608_v17 }
 0x482   :  { %612 = vmax.xlane.f32.xlu1 %v611_v20 }
 0x485   :  { %603 = vmax.xlane.f32.xlu0 %v602_v22 }
 0x486   :  { %621 = vmax.xlane.f32.xlu1 %v620_v25 }
 0x49b   :  { %685 = vrot.lane.b32.xlu0 %v2839_v63, %s2723_s23 }
 0x4ba   :  { %615 = vmax.xlane.f32.xlu0 %v614_v39 }
 0x4be   :  { %618 = vmax.xlane.f32.xlu0 %v617_v40 }
 0x4d9   :  { %v607_v13 = vpop.xlane.xlu0 %606 }
 0x4da   :  { %v625_v44 = vsub.f32 %v577_v0, %v607_v13  ;;  %v601_v45 = vpop.xlane.xlu1 %600 }
 0x4db   :  { %v623_v61 = vsub.f32 %v569_v2, %v601_v45 }
 0x4dc   :  { %v635_v1 = vmul.f32 1.442695, %v625_v44 }
 0x4dd   :  { %v631_v3 = vmul.f32 1.442695, %v623_v61  ;;  %v684_v5 = vpop.permute.xlu0 %683 }
 0x4de   :  { %v682_v4 = vpop.permute.xlu1 %681 }
 0x4df   :  { %2592 = vpow2.f32 %v631_v3  ;;  %2381 = vmatprep.subr.bf16.mxu0 %v682_v4 }
 0x4e0   :  { %2382 = vmatpush3.bf16.msra.mxu0 %v682_v4  ;;  %2594 = vpow2.f32 %v635_v1 }
 0x4e1   :  { %2383 = vmatprep.subr.bf16.mxu0 %v684_v5 }
 0x4e4   :  { %2384 = vmatpush3.bf16.msra.mxu0 %v684_v5 }
 0x4e9   :  { %v2593_v6 = vpop.eup %2592 }
 0x4ea   :  { %v647_v7 = vsel %vm336_vm2, %v2593_v6, 0.0  ;;  %v2595_v8 = vpop.eup %2594 }
 0x4eb   :  { %648 = vadd.xlane.f32.xlu0 %v647_v7  ;;  %v653_v9 = vsel %vm336_vm2, %v2595_v8, 0.0 }
 0x4ef   :  { %654 = vadd.xlane.f32.xlu0 %v653_v9 }
 0x505   :  { %954 = vrot.lane.b32.xlu0 %v2816_v32, %s2724_s26 }
 0x509   :  { %960 = vrot.lane.b32.xlu0 %v2836_v62, %s2724_s26 }
 0x50d   :  { %1115 = vrot.lane.b32.xlu0 %v2818_v33, %s2724_s26 }
 0x50e   :  { %v610_v0 = vpop.xlane.xlu0 %609 }
 0x50f   :  { %v626_v2 = vsub.f32 %v580_v11, %v610_v0  ;;  %v242_v11 = vpack.c.bf16 %v2926_v51, %v2924_v50  ;;  %v613_v61 = vpop.xlane.xlu1 %612 }
 0x510   :  { %v627_v1 = vsub.f32 %v2991_v12, %v613_v61 }
 0x511   :  { %v637_v10 = vmul.f32 1.442695, %v626_v2 }
 0x512   :  { %v604_v17 = vpop.xlane.xlu0 %603  ;;  %v639_v51 = vmul.f32 1.442695, %v627_v1 }
 0x513   :  { %v624_v20 = vsub.f32 %v572_v15, %v604_v17  ;;  %2596 = vpow2.f32 %v637_v10  ;;  %v622_v50 = vpop.xlane.xlu1 %621 }
 0x515   :  { %v633_v22 = vmul.f32 1.442695, %v624_v20 }
 0x516   :  { %v686_v25 = vpop.permute.xlu0 %685 }
 0x517   :  { %2598 = vpow2.f32 %v633_v22  ;;  %2385 = vmatprep.subr.bf16.mxu0 %v686_v25 }
 0x518   :  { %2386 = vmatpush3.bf16.msra.mxu0 %v686_v25  ;;  %2600 = vpow2.f32 %v639_v51 }
 0x519   :  { %2395 = vmatprep.subr.bf16.mxu0 %v2570_v29 }
 0x51d   :  { %v2597_v39 = vpop.eup %2596 }
 0x51e   :  { %v672_v45 = vpack.c.bf16 %v2597_v39, %v2595_v8  ;;  %v656_v15 = vsel %vm336_vm2, %v2597_v39, 0.0 }
 0x521   :  { %v2599_v40 = vpop.eup %2598 }
 0x522   :  { %v650_v13 = vsel %vm336_vm2, %v2599_v40, 0.0  ;;  %v671_v44 = vpack.c.bf16 %v2599_v40, %v2593_v6  ;;  %v3042_v0 = vpop.eup %2600 }
 0x523   :  { %651 = vadd.xlane.f32.xlu1 %v650_v13 }
 0x524   :  { %2387 = vmatprep.mubr.msk.bf16.mxu0 %vm336_vm2, %v671_v44 }
 0x525   :  { %2388 = vmatmul.mubr.msk.bf16.vlgmr.msra.gmra.mrb[16].mxu0 %vm336_vm2, %v672_v45 }
 0x526   :  { %2396 = vmatpush3.bf16.msra.mxu0 %v2570_v29  ;;  %v630_v29 = vsub.f32 %v2996_v18, %v622_v50 }
 0x527   :  { %2415 = vmatprep.subr.bf16.mxu0 %v242_v11  ;;  %657 = vadd.xlane.f32.xlu1 %v656_v15 }
 0x528   :  { %v645_v6 = vmul.f32 1.442695, %v630_v29 }
 0x538   :  { %956 = vrot.lane.b32.xlu1 %v2824_v42, %s2724_s26 }
 0x53c   :  { %958 = vrot.lane.b32.xlu1 %v2830_v52, %s2724_s26 }
 0x540   :  { %1117 = vrot.lane.b32.xlu1 %v2826_v43, %s2724_s26 }
 0x547   :  { %v616_v3 = vpop.xlane.xlu0 %615 }
 0x548   :  { %v628_v4 = vsub.f32 %v3009_v30, %v616_v3 }
 0x54a   :  { %v641_v5 = vmul.f32 1.442695, %v628_v4 }
 0x54b   :  { %v619_v7 = vpop.xlane.xlu0 %618 }
 0x54c   :  { %2602 = vpow2.f32 %v641_v5  ;;  %v629_v8 = vsub.f32 %v3012_v36, %v619_v7 }
 0x54d   :  { %2604 = vpow2.f32 %v645_v6 }
 0x54e   :  { %v643_v9 = vmul.f32 1.442695, %v629_v8 }
 0x550   :  { %2606 = vpow2.f32 %v643_v9 }
 0x556   :  { %v3044_v12 = vpop.eup %2602 }
 0x557   :  { %v673_v18 = vpack.c.bf16 %v3044_v12, %v3042_v0  ;;  %v3048_v2 = vpop.eup %2604 }
 0x559   :  { %2391 = vmatprep.mubr.msk.bf16.mxu0 %vm336_vm2, %v673_v18 }
 0x55a   :  { %v3051_v30 = vpop.eup %2606 }
 0x55b   :  { %v674_v10 = vpack.c.bf16 %v3048_v2, %v3051_v30 }
 0x55d   :  { %2392 = vmatmul.mubr.msk.bf16.gmra.mrb[20].mxu0 %vm336_vm2, %v674_v10 }
 0x578   :  { %v649_v36 = vpop.xlane.xlu0 %648 }
 0x579   :  { %2608 = vrcp.f32 %v649_v36 }
 0x57c   :  { %v655_v20 = vpop.xlane.xlu0 %654 }
 0x57d   :  { %2610 = vrcp.f32 %v655_v20 }
 0x580   :  { %v955_v25 = vpop.permute.xlu0 %954 }
 0x583   :  { %v2609_v39 = vpop.eup %2608 }
 0x584   :  { %v961_v29 = vpop.permute.xlu0 %960 }
 0x587   :  { %v2611_v13 = vpop.eup %2610 }
 0x588   :  { %v1116_v8 = vpop.permute.xlu0 %1115 }
 0x5b0   :  { %v652_v17 = vpop.xlane.xlu1 %651 }
 0x5b4   :  { %v658_v22 = vpop.xlane.xlu1 %657 }
 0x5b5   :  { %2612 = vrcp.f32 %v658_v22 }
 0x5b6   :  { %2614 = vrcp.f32 %v652_v17 }
 0x5b8   :  { %v957_v6 = vpop.permute.xlu1 %956 }
 0x5bc   :  { %v959_v9 = vpop.permute.xlu1 %958 }
 0x5bf   :  { %v2613_v45 = vpop.eup %2612 }
 0x5c0   :  { %v2615_v61 = vpop.eup %2614  ;;  %v1118_v18 = vpop.permute.xlu1 %1117 }
 0x5f8   :  { %v2389_v40 = vpop.f32.mrb[16].mxu0 }
 0x5f9   :  { %v737_v44 = vpop.f32.mrb[17].mxu0  ;;  %v778_v1 = vmul.f32 %v2611_v13, %v2389_v40 }
 0x5fa   :  { %v2390_v15 = vpop.f32.mrb[18].mxu0  ;;  %v776_v3 = vmul.f32 %v2609_v39, %v737_v44 }
 0x5fb   :  { %v779_v50 = vmul.f32 %v2613_v45, %v2390_v15  ;;  %v740_v51 = vpop.f32.mrb[19].mxu0 }
 0x5fc   :  { %v777_v4 = vmul.f32 %v2615_v61, %v740_v51 }
 0x5fd   :  { %v785_v5 = vpack.c.bf16 %v779_v50, %v778_v1 }
 0x5fe   :  { %v784_v7 = vpack.c.bf16 %v777_v4, %v776_v3 }
 0x600   :  { %2397 = vmatprep.mubr.msk.bf16.mxu0 %vm258_vm1, %v784_v7 }
 0x601   :  { %2398 = vmatmul.mubr.msk.bf16.vlgmr.msra.gmra.mrb[24].mxu0 %vm258_vm1, %v785_v5 }
 0x602   :  { %2416 = vmatpush3.bf16.msra.mxu0 %v242_v11  ;;  %2417 = vmatprep.mubr.msk.bf16.mxu0 %vm258_vm1, %v955_v25 }
 0x603   :  { %2425 = vmatprep.subr.bf16.mxu0 %v1116_v8 }
 0x609   :  { %2418 = vmatmul.mubr.msk.bf16.vlgmr.msra.gmra.mrb[28].mxu0 %vm258_vm1, %v957_v6 }
 0x60a   :  { %2426 = vmatpush3.bf16.msra.mxu0 %v1116_v8  ;;  %2421 = vmatprep.mubr.msk.bf16.mxu0 %vm258_vm1, %v959_v9 }
 0x60b   :  { %2427 = vmatprep.subr.bf16.mxu0 %v1118_v18 }
 0x60e   :  { %2428 = vmatpush3.bf16.msra.mxu0 %v1118_v18 }
 0x611   :  { %2422 = vmatmul.mubr.msk.bf16.gmra.mrb[32].mxu0 %vm258_vm1, %v961_v29 }
 0x630   :  { %v3062_v10 = vpop.f32.mrb[20].mxu0 }
 0x631   :  { %v3064_v36 = vpop.f32.mrb[21].mxu0 }
 0x632   :  { %v3066_v17 = vpop.f32.mrb[22].mxu0 }
 0x633   :  { %v3068_v11 = vpop.f32.mrb[23].mxu0 }
 0x6d4   :  { %v3070_v20 = vpop.f32.mrb[24].mxu0 }
 0x6d5   :  { %v3072_v22 = vpop.f32.mrb[25].mxu0 }
 0x6d6   :  { %v3074_v25 = vpop.f32.mrb[26].mxu0 }
 0x6d7   :  { %v3076_v39 = vpop.f32.mrb[27].mxu0 }
 0x6dc   :  { %v2419_v40 = vpop.f32.mrb[28].mxu0 }
 0x6dd   :  { %v3079_v13 = vadd.f32 %v2419_v40, %v2861_v14  ;;  %v1008_v44 = vpop.f32.mrb[29].mxu0 }
 0x6de   :  { %v3082_v45 = vadd.f32 %v1008_v44, %v2866_v16  ;;  %v2420_v15 = vpop.f32.mrb[30].mxu0 }
 0x6df   :  { %v1011_v61 = vpop.f32.mrb[31].mxu0  ;;  %v1045_v1 = vsel %vm336_vm2, %v3079_v13, -inf  ;;  %v3087_v50 = vadd.f32 %v2420_v15, %v2874_v23 }
 0x6e0   :  { %v3090_v51 = vadd.f32 %v1011_v61, %v2881_v26  ;;  %1046 = vmax.xlane.f32.xlu0 %v1045_v1  ;;  %v1039_v14 = vsel %vm336_vm2, %v3082_v45, -inf }
 0x6e1   :  { %1040 = vmax.xlane.f32.xlu1 %v1039_v14  ;;  %v1048_v3 = vsel %vm336_vm2, %v3087_v50, -inf }
 0x6e2   :  { %v1042_v16 = vsel %vm336_vm2, %v3090_v51, -inf }
 0x6e4   :  { %1043 = vmax.xlane.f32.xlu0 %v1042_v16  ;;  %v2423_v29 = vpop.f32.mrb[32].mxu0 }
 0x6e5   :  { %v3099_v4 = vadd.f32 %v2423_v29, %v2894_v37  ;;  %1049 = vmax.xlane.f32.xlu1 %v1048_v3  ;;  %v1024_v23 = vpop.f32.mrb[33].mxu0 }
 0x6e6   :  { %v2424_v26 = vpop.f32.mrb[34].mxu0  ;;  %v3102_v5 = vadd.f32 %v1024_v23, %v2902_v41  ;;  %v662_v41 = vsel %vm336_vm2, %v3044_v12, 0.0  ;;  %v394_v12 = vsel %vm336_vm2, %v2934_v21, 0.0  ;;  %v3157_v21 = vld [vmem:[%s3477_s4] sm:$0xff]  }
 0x6e7   :  { %v3105_v6 = vadd.f32 %v2424_v26, %v2886_v28  ;;  %v1027_v7 = vpop.f32.mrb[35].mxu0  ;;  %v1057_v8 = vsel %vm336_vm2, %v3099_v4, -inf  ;;  %2405 = vmatprep.subr.bf16.mxu1 %v3157_v21 }
 0x6e8   :  { %1058 = vmax.xlane.f32.xlu0 %v1057_v8  ;;  %v3110_v9 = vadd.f32 %v1027_v7, %v2909_v46  ;;  %v1051_v18 = vsel %vm336_vm2, %v3102_v5, -inf  ;;  %v659_v46 = vsel %vm336_vm2, %v3042_v0, 0.0  ;;  %v391_v0 = vsel %vm336_vm2, %v2938_v27, 0.0 }
 0x6e9   :  { %v1060_v37 = vsel %vm336_vm2, %v3105_v6, -inf  ;;  %v406_v27 = vsel %vm336_vm2, %v2953_v38, 0.0 }
 0x6ea   :  { %1061 = vmax.xlane.f32.xlu1 %v1060_v37  ;;  %v1054_v28 = vsel %vm336_vm2, %v3110_v9, -inf }
 0x6ec   :  { %1052 = vmax.xlane.f32.xlu0 %v1051_v18 }
 0x6ee   :  { %1055 = vmax.xlane.f32.xlu1 %v1054_v28 }
 0x6ff   :  { %1119 = vrot.lane.b32.xlu1 %v2833_v53, %s2724_s26 }
 0x702   :  { %1121 = vrot.lane.b32.xlu0 %v2839_v63, %s2724_s26 }
 0x703   :  { %1315 = vrot.lane.b32.xlu1 %v2816_v32, %s2725_s27  ;;  %v665_v32 = vsel %vm336_vm2, %v3051_v30, 0.0 }
 0x706   :  { %1317 = vrot.lane.b32.xlu0 %v2824_v42, %s2725_s27  ;;  %v668_v42 = vsel %vm336_vm2, %v3048_v2, 0.0  ;;  %v397_v2 = vsel %vm336_vm2, %v2949_v34, 0.0 }
 0x707   :  { %1319 = vrot.lane.b32.xlu1 %v2830_v52, %s2725_s27  ;;  %v385_v52 = vsel %vm336_vm2, %v2932_v19, 0.0  ;;  %v400_v19 = vsel %vm336_vm2, %v2951_v35, 0.0 }
 0x70a   :  { %1321 = vrot.lane.b32.xlu0 %v2836_v62, %s2725_s27  ;;  %v388_v62 = vsel %vm336_vm2, %v2936_v24, 0.0  ;;  %v403_v24 = vsel %vm336_vm2, %v2947_v31, 0.0 }
 0x729   :  { %663 = vadd.xlane.f32.xlu0 %v662_v41 }
 0x72b   :  { %660 = vadd.xlane.f32.xlu1 %v659_v46 }
 0x72d   :  { %666 = vadd.xlane.f32.xlu0 %v665_v32 }
 0x72f   :  { %669 = vadd.xlane.f32.xlu1 %v668_v42 }
 0x731   :  { %386 = vadd.xlane.f32.xlu0 %v385_v52  ;;  %v243_v52 = vpack.c.bf16 %v2930_v57, %v2928_v54 }
 0x733   :  { %389 = vadd.xlane.f32.xlu1 %v388_v62 }
 0x735   :  { %392 = vadd.xlane.f32.xlu0 %v391_v0 }
 0x737   :  { %395 = vadd.xlane.f32.xlu1 %v394_v12 }
 0x739   :  { %398 = vadd.xlane.f32.xlu0 %v397_v2 }
 0x73b   :  { %401 = vadd.xlane.f32.xlu1 %v400_v19 }
 0x73d   :  { %404 = vadd.xlane.f32.xlu0 %v403_v24 }
 0x73f   :  { %407 = vadd.xlane.f32.xlu1 %v406_v27 }
 0x750   :  { %1478 = vrot.lane.b32.xlu1 %v2826_v43, %s2725_s27 }
 0x753   :  { %1476 = vrot.lane.b32.xlu0 %v2818_v33, %s2725_s27 }
 0x76d   :  { %v1047_v34 = vpop.xlane.xlu0 %1046 }
 0x76e   :  { %v1065_v31 = vsub.f32 %v3079_v13, %v1047_v34  ;;  %v1041_v35 = vpop.xlane.xlu1 %1040 }
 0x76f   :  { %v1063_v38 = vsub.f32 %v3082_v45, %v1041_v35 }
 0x770   :  { %v1075_v30 = vmul.f32 1.442695, %v1065_v31 }
 0x771   :  { %v1071_v40 = vmul.f32 1.442695, %v1063_v38  ;;  %v1044_v44 = vpop.xlane.xlu0 %1043 }
 0x772   :  { %2616 = vpow2.f32 %v1075_v30  ;;  %v1064_v15 = vsub.f32 %v3090_v51, %v1044_v44  ;;  %v1050_v61 = vpop.xlane.xlu1 %1049 }
 0x773   :  { %v1066_v43 = vsub.f32 %v3087_v50, %v1050_v61  ;;  %2618 = vpow2.f32 %v1071_v40 }
 0x774   :  { %v1073_v1 = vmul.f32 1.442695, %v1064_v15 }
 0x775   :  { %v1077_v14 = vmul.f32 1.442695, %v1066_v43  ;;  %v1059_v16 = vpop.xlane.xlu0 %1058 }
 0x776   :  { %2620 = vpow2.f32 %v1073_v1  ;;  %v1069_v33 = vsub.f32 %v3099_v4, %v1059_v16 }
 0x777   :  { %2622 = vpow2.f32 %v1077_v14  ;;  %v1062_v13 = vpop.xlane.xlu1 %1061 }
 0x778   :  { %v1083_v29 = vmul.f32 1.442695, %v1069_v33  ;;  %v1070_v45 = vsub.f32 %v3105_v6, %v1062_v13 }
 0x779   :  { %v1053_v3 = vpop.xlane.xlu0 %1052 }
 0x77a   :  { %2624 = vpow2.f32 %v1083_v29  ;;  %v1085_v23 = vmul.f32 1.442695, %v1070_v45  ;;  %v1067_v51 = vsub.f32 %v3102_v5, %v1053_v3 }
 0x77b   :  { %v1056_v26 = vpop.xlane.xlu1 %1055 }
 0x77c   :  { %v2617_v7 = vpop.eup %2616  ;;  %v1079_v50 = vmul.f32 1.442695, %v1067_v51  ;;  %v1068_v8 = vsub.f32 %v3110_v9, %v1056_v26  ;;  %2626 = vpow2.f32 %v1085_v23 }
 0x77d   :  { %v1093_v37 = vsel %vm336_vm2, %v2617_v7, 0.0  ;;  %v2619_v18 = vpop.eup %2618  ;;  %v1122_v46 = vpop.permute.xlu0 %1121 }
 0x77e   :  { %2628 = vpow2.f32 %v1079_v50  ;;  %v1081_v4 = vmul.f32 1.442695, %v1068_v8  ;;  %1094 = vadd.xlane.f32.xlu0 %v1093_v37  ;;  %v1087_v5 = vsel %vm336_vm2, %v2619_v18, 0.0 }
 0x77f   :  { %v1120_v28 = vpop.permute.xlu1 %1119 }
 0x780   :  { %v2621_v41 = vpop.eup %2620  ;;  %2630 = vpow2.f32 %v1081_v4  ;;  %2429 = vmatprep.subr.bf16.mxu0 %v1120_v28 }
 0x781   :  { %v2623_v6 = vpop.eup %2622  ;;  %2430 = vmatpush3.bf16.msra.mxu0 %v1120_v28  ;;  %v1111_v32 = vpack.c.bf16 %v2621_v41, %v2619_v18  ;;  %v1090_v12 = vsel %vm336_vm2, %v2621_v41, 0.0  ;;  %v1318_v38 = vpop.permute.xlu0 %1317 }
 0x782   :  { %1088 = vadd.xlane.f32.xlu0 %v1087_v5  ;;  %2431 = vmatprep.subr.bf16.mxu0 %v1122_v46  ;;  %v1096_v9 = vsel %vm336_vm2, %v2623_v6, 0.0  ;;  %v1112_v0 = vpack.c.bf16 %v2623_v6, %v2617_v7 }
 0x783   :  { %2433 = vmatprep.mubr.msk.bf16.mxu0 %vm336_vm2, %v1111_v32  ;;  %1097 = vadd.xlane.f32.xlu1 %v1096_v9  ;;  %v1316_v35 = vpop.permute.xlu1 %1315 }
 0x784   :  { %v2625_v42 = vpop.eup %2624 }
 0x785   :  { %2432 = vmatpush3.bf16.msra.mxu0 %v1122_v46  ;;  %v1105_v62 = vsel %vm336_vm2, %v2625_v42, 0.0  ;;  %v1322_v40 = vpop.permute.xlu0 %1321 }
 0x786   :  { %1106 = vadd.xlane.f32.xlu0 %v1105_v62  ;;  %2451 = vmatprep.subr.bf16.mxu0 %v243_v52  ;;  %v2627_v2 = vpop.eup %2626 }
 0x787   :  { %1091 = vadd.xlane.f32.xlu1 %v1090_v12  ;;  %v1108_v54 = vsel %vm336_vm2, %v2627_v2, 0.0  ;;  %v1114_v31 = vpack.c.bf16 %v2627_v2, %v2625_v42  ;;  %v1320_v30 = vpop.permute.xlu1 %1319 }
 0x788   :  { %v2629_v19 = vpop.eup %2628  ;;  %2434 = vmatmul.mubr.msk.bf16.vlgmr.msra.gmra.mrb[36].mxu0 %vm336_vm2, %v1112_v0 }
 0x789   :  { %2452 = vmatpush3.bf16.msra.mxu0 %v243_v52  ;;  %v1099_v24 = vsel %vm336_vm2, %v2629_v19, 0.0 }
 0x78a   :  { %v2631_v27 = vpop.eup %2630  ;;  %1100 = vadd.xlane.f32.xlu0 %v1099_v24 }
 0x78b   :  { %1109 = vadd.xlane.f32.xlu1 %v1108_v54  ;;  %v1113_v57 = vpack.c.bf16 %v2631_v27, %v2629_v19  ;;  %v1102_v34 = vsel %vm336_vm2, %v2631_v27, 0.0 }
 0x78d   :  { %2437 = vmatprep.mubr.msk.bf16.mxu0 %vm336_vm2, %v1113_v57 }
 0x78f   :  { %1103 = vadd.xlane.f32.xlu1 %v1102_v34 }
 0x790   :  { %2438 = vmatmul.mubr.msk.bf16.gmra.mrb[40].mxu0 %vm336_vm2, %v1114_v31 }
 0x791   :  { %2453 = vmatprep.mubr.msk.bf16.mxu0 %vm258_vm1, %v1316_v35 }
 0x798   :  { %2454 = vmatmul.mubr.msk.bf16.vlgmr.msra.gmra.mrb[44].mxu0 %vm258_vm1, %v1318_v38 }
 0x799   :  { %2457 = vmatprep.mubr.msk.bf16.mxu0 %vm258_vm1, %v1320_v30 }
 0x7a0   :  { %2458 = vmatmul.mubr.msk.bf16.gmra.mrb[48].mxu0 %vm258_vm1, %v1322_v40 }
 0x7b6   :  { %v664_v44 = vpop.xlane.xlu0 %663 }
 0x7b7   :  { %2632 = vrcp.f32 %v664_v44 }
 0x7b8   :  { %v661_v15 = vpop.xlane.xlu1 %660 }
 0x7b9   :  { %2634 = vrcp.f32 %v661_v15 }
 0x7ba   :  { %v667_v61 = vpop.xlane.xlu0 %666 }
 0x7bb   :  { %2636 = vrcp.f32 %v667_v61 }
 0x7bc   :  { %v670_v43 = vpop.xlane.xlu1 %669 }
 0x7bd   :  { %2638 = vrcp.f32 %v670_v43 }
 0x7be   :  { %v387_v1 = vpop.xlane.xlu0 %386 }
 0x7bf   :  { %2640 = vrcp.f32 %v387_v1 }
 0x7c0   :  { %v390_v14 = vpop.xlane.xlu1 %389 }
 0x7c1   :  { %v2633_v16 = vpop.eup %2632  ;;  %2642 = vrcp.f32 %v390_v14 }
 0x7c2   :  { %v393_v33 = vpop.xlane.xlu0 %392  ;;  %v781_v3 = vmul.f32 %v2633_v16, %v3068_v11 }
 0x7c3   :  { %v2635_v13 = vpop.eup %2634  ;;  %2644 = vrcp.f32 %v393_v33 }
 0x7c4   :  { %v396_v29 = vpop.xlane.xlu1 %395  ;;  %v780_v45 = vmul.f32 %v2635_v13, %v3064_v36  ;;  %v3198_v36 = vld [vmem:[%s3477_s4 + $0x10] sm:$0xff]  }
 0x7c5   :  { %v2637_v23 = vpop.eup %2636  ;;  %2646 = vrcp.f32 %v396_v29 }
 0x7c6   :  { %v399_v51 = vpop.xlane.xlu0 %398  ;;  %v786_v26 = vpack.c.bf16 %v781_v3, %v780_v45  ;;  %v782_v50 = vmul.f32 %v2637_v23, %v3062_v10 }
 0x7c7   :  { %v2639_v7 = vpop.eup %2638  ;;  %2648 = vrcp.f32 %v399_v51 }
 0x7c8   :  { %v783_v8 = vmul.f32 %v2639_v7, %v3066_v17  ;;  %2401 = vmatprep.mubr.msk.bf16.mxu1 %vm258_vm1, %v786_v26  ;;  %v402_v37 = vpop.xlane.xlu1 %401 }
 0x7c9   :  { %v2641_v18 = vpop.eup %2640  ;;  %2650 = vrcp.f32 %v402_v37 }
 0x7ca   :  { %v787_v4 = vpack.c.bf16 %v783_v8, %v782_v50  ;;  %v405_v28 = vpop.xlane.xlu0 %404  ;;  %v498_v10 = vmul.f32 %v2641_v18, %v2967_v48 }
 0x7cb   :  { %v2643_v11 = vpop.eup %2642  ;;  %2652 = vrcp.f32 %v405_v28 }
 0x7cc   :  { %2402 = vmatmul.mubr.msk.bf16.vlgmr.msra.gmra.mrb[24].mxu1 %vm258_vm1, %v787_v4  ;;  %v408_v41 = vpop.xlane.xlu1 %407  ;;  %v499_v17 = vmul.f32 %v2643_v11, %v2971_v55 }
 0x7cd   :  { %v2645_v6 = vpop.eup %2644  ;;  %2654 = vrcp.f32 %v408_v41  ;;  %2406 = vmatpush3.bf16.msra.mxu1 %v3157_v21 }
 0x7ce   :  { %v506_v46 = vpack.c.bf16 %v499_v17, %v498_v10  ;;  %2441 = vmatprep.subr.bf16.mxu1 %v3198_v36  ;;  %v500_v32 = vmul.f32 %v2645_v6, %v2965_v47  ;;  %v1477_v12 = vpop.permute.xlu0 %1476  ;;  %v2704_v17 = vld [vmem:[%s3476_s1 + $0x10] sm:$0xff] }
 0x7cf   :  { %v2647_v5 = vpop.eup %2646 }
 0x7d0   :  { %v501_v9 = vmul.f32 %v2647_v5, %v2969_v49  ;;  %2407 = vmatprep.mubr.msk.bf16.mxu1 %vm258_vm1, %v506_v46  ;;  %v1479_v27 = vpop.permute.xlu1 %1478 }
 0x7d1   :  { %v2649_v42 = vpop.eup %2648 }
 0x7d2   :  { %v507_v52 = vpack.c.bf16 %v501_v9, %v500_v32  ;;  %v502_v48 = vmul.f32 %v2649_v42, %v2975_v58  ;;  %v2705_v32 = vld [vmem:[%s3476_s1] sm:$0xff]  ;;  %v2706_v42 = vld [vmem:[%s3476_s1 + $0x18] sm:$0xff] }
 0x7d3   :  { %v2651_v62 = vpop.eup %2650 }
 0x7d4   :  { %2408 = vmatmul.mubr.msk.bf16.vlgmr.msra.gmra.mrb[28].mxu1 %vm258_vm1, %v507_v52  ;;  %v503_v55 = vmul.f32 %v2651_v62, %v2979_v60 }
 0x7d5   :  { %v2653_v0 = vpop.eup %2652  ;;  %2442 = vmatpush3.bf16.msra.mxu1 %v3198_v36 }
 0x7d6   :  { %2461 = vmatprep.subr.bf16.mxu1 %v1477_v12  ;;  %v508_v2 = vpack.c.bf16 %v503_v55, %v502_v48  ;;  %v504_v49 = vmul.f32 %v2653_v0, %v2973_v56  ;;  %v2707_v55 = vld [vmem:[%s3476_s1 + $0x8] sm:$0xff] }
 0x7d7   :  { %v2655_v47 = vpop.eup %2654 }
 0x7d8   :  { %2411 = vmatprep.mubr.msk.bf16.mxu1 %vm258_vm1, %v508_v2  ;;  %v505_v19 = vmul.f32 %v2655_v47, %v2977_v59 }
 0x7da   :  { %v509_v24 = vpack.c.bf16 %v505_v19, %v504_v49  ;;  %v2708_v49 = vld [vmem:[%s3476_s1 + $0x30] sm:$0xff] }
 0x7dc   :  { %2412 = vmatmul.mubr.msk.bf16.gmra.mrb[24].mxu1 %vm258_vm1, %v509_v24 }
 0x80b   :  { %v1095_v58 = vpop.xlane.xlu0 %1094 }
 0x80c   :  { %2656 = vrcp.f32 %v1095_v58 }
 0x80f   :  { %v1089_v60 = vpop.xlane.xlu0 %1088 }
 0x810   :  { %v1098_v54 = vpop.xlane.xlu1 %1097  ;;  %2658 = vrcp.f32 %v1089_v60 }
 0x811   :  { %2660 = vrcp.f32 %v1098_v54  ;;  %v2709_v54 = vld [vmem:[%s3476_s1 + $0x20] sm:$0xff] }
 0x813   :  { %v1107_v34 = vpop.xlane.xlu0 %1106 }
 0x814   :  { %v1092_v57 = vpop.xlane.xlu1 %1091 }
 0x815   :  { %2662 = vrcp.f32 %v1092_v57  ;;  %v2710_v57 = vld [vmem:[%s3476_s1 + $0x38] sm:$0xff] }
 0x816   :  { %2664 = vrcp.f32 %v1107_v34  ;;  %v2657_v56 = vpop.eup %2656 }
 0x817   :  { %v1101_v35 = vpop.xlane.xlu0 %1100 }
 0x818   :  { %v1110_v31 = vpop.xlane.xlu1 %1109  ;;  %2666 = vrcp.f32 %v1101_v35 }
 0x819   :  { %2668 = vrcp.f32 %v1110_v31 }
 0x81a   :  { %v2659_v30 = vpop.eup %2658 }
 0x81b   :  { %v2661_v44 = vpop.eup %2660 }
 0x81c   :  { %v1104_v38 = vpop.xlane.xlu1 %1103 }
 0x81d   :  { %2670 = vrcp.f32 %v1104_v38  ;;  %v2711_v38 = vld [vmem:[%s3476_s1 + $0x28] sm:$0xff] }
 0x81f   :  { %v2663_v61 = vpop.eup %2662 }
 0x820   :  { %v2665_v45 = vpop.eup %2664 }
 0x822   :  { %v2667_v23 = vpop.eup %2666 }
 0x823   :  { %v2669_v26 = vpop.eup %2668 }
 0x827   :  { %v2671_v50 = vpop.eup %2670 }
 0x85b   :  { %v2435_v59 = vpop.f32.mrb[36].mxu0 }
 0x85c   :  { %v1173_v40 = vpop.f32.mrb[37].mxu0  ;;  %v1214_v43 = vmul.f32 %v2657_v56, %v2435_v59 }
 0x85d   :  { %v2436_v15 = vpop.f32.mrb[38].mxu0  ;;  %v1212_v16 = vmul.f32 %v2659_v30, %v1173_v40 }
 0x85e   :  { %v1215_v1 = vmul.f32 %v2661_v44, %v2436_v15  ;;  %v1176_v14 = vpop.f32.mrb[39].mxu0 }
 0x85f   :  { %v1213_v33 = vmul.f32 %v2663_v61, %v1176_v14 }
 0x860   :  { %v1221_v13 = vpack.c.bf16 %v1215_v1, %v1214_v43 }
 0x861   :  { %v1220_v29 = vpack.c.bf16 %v1213_v33, %v1212_v16 }
 0x863   :  { %v2439_v3 = vpop.f32.mrb[40].mxu0  ;;  %2443 = vmatprep.mubr.msk.bf16.mxu1 %vm258_vm1, %v1220_v29 }
 0x864   :  { %v1189_v51 = vpop.f32.mrb[41].mxu0  ;;  %2444 = vmatmul.mubr.msk.bf16.vlgmr.msra.gmra.mrb[28].mxu1 %vm258_vm1, %v1221_v13  ;;  %v1218_v8 = vmul.f32 %v2665_v45, %v2439_v3 }
 0x865   :  { %2462 = vmatpush3.bf16.msra.mxu1 %v1477_v12  ;;  %v2440_v7 = vpop.f32.mrb[42].mxu0  ;;  %v1216_v4 = vmul.f32 %v2667_v23, %v1189_v51 }
 0x866   :  { %v1219_v37 = vmul.f32 %v2669_v26, %v2440_v7  ;;  %2463 = vmatprep.subr.bf16.mxu1 %v1479_v27  ;;  %v1192_v18 = vpop.f32.mrb[43].mxu0 }
 0x867   :  { %v1217_v28 = vmul.f32 %v2671_v50, %v1192_v18 }
 0x868   :  { %v1223_v11 = vpack.c.bf16 %v1219_v37, %v1218_v8 }
 0x869   :  { %v1222_v41 = vpack.c.bf16 %v1217_v28, %v1216_v4  ;;  %2464 = vmatpush3.bf16.msra.mxu1 %v1479_v27 }
 0x86b   :  { %2447 = vmatprep.mubr.msk.bf16.mxu1 %vm258_vm1, %v1222_v41  ;;  %v2455_v10 = vpop.f32.mrb[44].mxu0 }
 0x86c   :  { %v1378_v6 = vadd.f32 %v2704_v17, %v2455_v10  ;;  %2448 = vmatmul.mubr.msk.bf16.gmra.mrb[24].mxu1 %vm258_vm1, %v1223_v11  ;;  %v1369_v46 = vpop.f32.mrb[45].mxu0 }
 0x86d   :  { %v2456_v5 = vpop.f32.mrb[46].mxu0  ;;  %v1370_v9 = vadd.f32 %v2705_v32, %v1369_v46 }
 0x86e   :  { %v1381_v52 = vadd.f32 %v2706_v42, %v2456_v5  ;;  %v1372_v62 = vpop.f32.mrb[47].mxu0  ;;  %v1406_v48 = vsel %vm336_vm2, %v1378_v6, -inf }
 0x86f   :  { %1407 = vmax.xlane.f32.xlu0 %v1406_v48  ;;  %v1373_v0 = vadd.f32 %v2707_v55, %v1372_v62  ;;  %v1400_v2 = vsel %vm336_vm2, %v1370_v9, -inf }
 0x870   :  { %v1409_v12 = vsel %vm336_vm2, %v1381_v52, -inf }
 0x871   :  { %1410 = vmax.xlane.f32.xlu1 %v1409_v12  ;;  %v1403_v27 = vsel %vm336_vm2, %v1373_v0, -inf }
 0x873   :  { %1401 = vmax.xlane.f32.xlu0 %v1400_v2  ;;  %v2459_v47 = vpop.f32.mrb[48].mxu0 }
 0x874   :  { %v1394_v19 = vadd.f32 %v2708_v49, %v2459_v47  ;;  %v1385_v24 = vpop.f32.mrb[49].mxu0 }
 0x875   :  { %1404 = vmax.xlane.f32.xlu1 %v1403_v27  ;;  %v2460_v58 = vpop.f32.mrb[50].mxu0  ;;  %v1386_v60 = vadd.f32 %v2709_v54, %v1385_v24 }
 0x876   :  { %v1397_v34 = vadd.f32 %v2710_v57, %v2460_v58  ;;  %v1388_v31 = vpop.f32.mrb[51].mxu0  ;;  %v1418_v35 = vsel %vm336_vm2, %v1394_v19, -inf  ;;  %v3271_v58 = vld [vmem:[%s3477_s4 + $0x18] sm:$0xff]  }
 0x877   :  { %1419 = vmax.xlane.f32.xlu0 %v1418_v35  ;;  %v1389_v56 = vadd.f32 %v2711_v38, %v1388_v31  ;;  %v1412_v30 = vsel %vm336_vm2, %v1386_v60, -inf }
 0x878   :  { %v1421_v59 = vsel %vm336_vm2, %v1397_v34, -inf }
 0x879   :  { %1422 = vmax.xlane.f32.xlu1 %v1421_v59  ;;  %v1415_v40 = vsel %vm336_vm2, %v1389_v56, -inf }
 0x87b   :  { %1413 = vmax.xlane.f32.xlu0 %v1412_v30 }
 0x87d   :  { %1416 = vmax.xlane.f32.xlu1 %v1415_v40 }
 0x88e   :  { %1480 = vrot.lane.b32.xlu1 %v2833_v53, %s2725_s27 }
 0x891   :  { %1482 = vrot.lane.b32.xlu0 %v2839_v63, %s2725_s27 }
 0x8fc   :  { %v1408_v44 = vpop.xlane.xlu0 %1407 }
 0x8fd   :  { %v1426_v1 = vsub.f32 %v1378_v6, %v1408_v44 }
 0x8fe   :  { %v1411_v15 = vpop.xlane.xlu1 %1410 }
 0x8ff   :  { %v1427_v61 = vsub.f32 %v1381_v52, %v1411_v15  ;;  %v1436_v3 = vmul.f32 1.442695, %v1426_v1 }
 0x900   :  { %v1402_v43 = vpop.xlane.xlu0 %1401 }
 0x901   :  { %v1424_v14 = vsub.f32 %v1370_v9, %v1402_v43  ;;  %v1438_v16 = vmul.f32 1.442695, %v1427_v61 }
 0x902   :  { %v1405_v33 = vpop.xlane.xlu1 %1404 }
 0x903   :  { %v1432_v13 = vmul.f32 1.442695, %v1424_v14  ;;  %v1425_v29 = vsub.f32 %v1373_v0, %v1405_v33 }
 0x904   :  { %v1420_v45 = vpop.xlane.xlu0 %1419 }
 0x905   :  { %2672 = vpow2.f32 %v1432_v13  ;;  %v1434_v23 = vmul.f32 1.442695, %v1425_v29  ;;  %v1430_v53 = vsub.f32 %v1394_v19, %v1420_v45 }
 0x906   :  { %2674 = vpow2.f32 %v1438_v16  ;;  %v1423_v51 = vpop.xlane.xlu1 %1422 }
 0x907   :  { %2676 = vpow2.f32 %v1434_v23  ;;  %v1431_v63 = vsub.f32 %v1397_v34, %v1423_v51  ;;  %v1444_v18 = vmul.f32 1.442695, %v1430_v53 }
 0x908   :  { %v1414_v26 = vpop.xlane.xlu0 %1413  ;;  %2678 = vpow2.f32 %v1436_v3 }
 0x909   :  { %v1428_v7 = vsub.f32 %v1386_v60, %v1414_v26  ;;  %v1446_v4 = vmul.f32 1.442695, %v1431_v63 }
 0x90a   :  { %v1417_v50 = vpop.xlane.xlu1 %1416 }
 0x90b   :  { %v1440_v8 = vmul.f32 1.442695, %v1428_v7  ;;  %v1429_v37 = vsub.f32 %v1389_v56, %v1417_v50 }
 0x90c   :  { %v1483_v17 = vpop.permute.xlu0 %1482 }
 0x90d   :  { %2680 = vpow2.f32 %v1440_v8  ;;  %v1442_v28 = vmul.f32 1.442695, %v1429_v37 }
 0x90e   :  { %v1481_v11 = vpop.permute.xlu1 %1480 }
 0x90f   :  { %v2673_v41 = vpop.eup %2672  ;;  %2682 = vpow2.f32 %v1442_v28  ;;  %2465 = vmatprep.subr.bf16.mxu1 %v1481_v11 }
 0x910   :  { %v2675_v10 = vpop.eup %2674  ;;  %2684 = vpow2.f32 %v1444_v18  ;;  %2466 = vmatpush3.bf16.msra.mxu1 %v1481_v11  ;;  %v1448_v6 = vsel %vm336_vm2, %v2673_v41, 0.0 }
 0x911   :  { %v2677_v46 = vpop.eup %2676  ;;  %2686 = vpow2.f32 %v1446_v4  ;;  %1449 = vadd.xlane.f32.xlu1 %v1448_v6  ;;  %2467 = vmatprep.subr.bf16.mxu1 %v1483_v17  ;;  %v1457_v42 = vsel %vm336_vm2, %v2675_v10, 0.0 }
 0x912   :  { %v1451_v5 = vsel %vm336_vm2, %v2677_v46, 0.0  ;;  %v1472_v32 = vpack.c.bf16 %v2677_v46, %v2673_v41  ;;  %v2679_v9 = vpop.eup %2678 }
 0x913   :  { %1452 = vadd.xlane.f32.xlu0 %v1451_v5  ;;  %v1473_v52 = vpack.c.bf16 %v2675_v10, %v2679_v9  ;;  %v1454_v62 = vsel %vm336_vm2, %v2679_v9, 0.0  ;;  %v3282_v10 = vld [vmem:[%s3478_s7] ss:$0 sm:$0xff] }
 0x914   :  { %2468 = vmatpush3.bf16.msra.mxu1 %v1483_v17  ;;  %2469 = vmatprep.mubr.msk.bf16.mxu1 %vm336_vm2, %v1472_v32 }
 0x915   :  { %1458 = vadd.xlane.f32.xlu1 %v1457_v42  ;;  %2477 = vmatprep.subr.bf16.mxu1 %v3271_v58 }
 0x917   :  { %v2681_v48 = vpop.eup %2680  ;;  %1455 = vadd.xlane.f32.xlu0 %v1454_v62  ;;  %2470 = vmatmul.mubr.msk.bf16.vlgmr.msra.gmra.mrb[32].mxu1 %vm336_vm2, %v1473_v52 }
 0x918   :  { %v1460_v12 = vsel %vm336_vm2, %v2681_v48, 0.0  ;;  %2478 = vmatpush3.bf16.msra.mxu1 %v3271_v58 }
 0x919   :  { %v2683_v55 = vpop.eup %2682 }
 0x91a   :  { %v2685_v0 = vpop.eup %2684  ;;  %v1463_v2 = vsel %vm336_vm2, %v2683_v55, 0.0  ;;  %v1474_v47 = vpack.c.bf16 %v2683_v55, %v2681_v48 }
 0x91b   :  { %v2687_v49 = vpop.eup %2686  ;;  %1461 = vadd.xlane.f32.xlu0 %v1460_v12  ;;  %1464 = vadd.xlane.f32.xlu1 %v1463_v2  ;;  %v1466_v19 = vsel %vm336_vm2, %v2685_v0, 0.0 }
 0x91c   :  { %2473 = vmatprep.mubr.msk.bf16.mxu1 %vm336_vm2, %v1474_v47  ;;  %v1469_v24 = vsel %vm336_vm2, %v2687_v49, 0.0  ;;  %v1475_v27 = vpack.c.bf16 %v2687_v49, %v2685_v0 }
 0x91f   :  { %1467 = vadd.xlane.f32.xlu0 %v1466_v19  ;;  %1470 = vadd.xlane.f32.xlu1 %v1469_v24  ;;  %v2575_v19 = vld [vmem:[%s3479_s3 + $0x8] sm:$0xff]  }
 0x920   :  { %2474 = vmatmul.mubr.msk.bf16.gmra.mrb[36].mxu1 %vm336_vm2, %v1475_v27 }
 0x99e   :  { %v1450_v60 = vpop.xlane.xlu1 %1449 }
 0x99f   :  { %2688 = vrcp.f32 %v1450_v60 }
 0x9a0   :  { %v1453_v54 = vpop.xlane.xlu0 %1452 }
 0x9a2   :  { %v1459_v34 = vpop.xlane.xlu1 %1458 }
 0x9a3   :  { %2690 = vrcp.f32 %v1459_v34 }
 0x9a4   :  { %v1456_v57 = vpop.xlane.xlu0 %1455 }
 0x9a5   :  { %2692 = vrcp.f32 %v1456_v57 }
 0x9a6   :  { %2694 = vrcp.f32 %v1453_v54 }
 0x9a8   :  { %v1462_v31 = vpop.xlane.xlu0 %1461  ;;  %v1465_v35 = vpop.xlane.xlu1 %1464 }
 0x9a9   :  { %2696 = vrcp.f32 %v1462_v31  ;;  %v2689_v59 = vpop.eup %2688 }
 0x9ac   :  { %v1468_v38 = vpop.xlane.xlu0 %1467  ;;  %v1471_v56 = vpop.xlane.xlu1 %1470 }
 0x9ad   :  { %2698 = vrcp.f32 %v1468_v38  ;;  %v2691_v40 = vpop.eup %2690 }
 0x9ae   :  { %2700 = vrcp.f32 %v1471_v56 }
 0x9af   :  { %v2693_v15 = vpop.eup %2692  ;;  %2702 = vrcp.f32 %v1465_v35 }
 0x9b0   :  { %v2695_v43 = vpop.eup %2694 }
 0x9b3   :  { %v2697_v3 = vpop.eup %2696 }
 0x9b7   :  { %v2699_v51 = vpop.eup %2698 }
 0x9b8   :  { %v2701_v26 = vpop.eup %2700 }
 0x9b9   :  { %v2703_v7 = vpop.eup %2702 }
 0x9ea   :  { %v2471_v30 = vpop.f32.mrb[32].mxu1 }
 0x9eb   :  { %v1534_v44 = vpop.f32.mrb[33].mxu1  ;;  %v1575_v1 = vmul.f32 %v2693_v15, %v2471_v30 }
 0x9ec   :  { %v2472_v61 = vpop.f32.mrb[34].mxu1  ;;  %v1573_v33 = vmul.f32 %v2689_v59, %v1534_v44 }
 0x9ed   :  { %v1576_v14 = vmul.f32 %v2691_v40, %v2472_v61  ;;  %v1537_v16 = vpop.f32.mrb[35].mxu1 }
 0x9ee   :  { %v1574_v13 = vmul.f32 %v2695_v43, %v1537_v16  ;;  %v2712_v43 = vld [vmem:[%s3477_s4 + $0x8] sm:$0xff]   ;;  %v2713_v16 = vld [vmem:[%s3474_s0] sm:$0xff] }
 0x9ef   :  { %v1582_v29 = vpack.c.bf16 %v1576_v14, %v1575_v1 }
 0x9f0   :  { %v1581_v45 = vpack.c.bf16 %v1574_v13, %v1573_v33 }
 0x9f2   :  { %2479 = vmatprep.mubr.msk.bf16.mxu1 %vm258_vm1, %v1581_v45 }
 0x9f3   :  { %v2475_v23 = vpop.f32.mrb[36].mxu1  ;;  %2480 = vmatmul.mubr.msk.bf16.vlgmr.msra.gmra.mrb[28].mxu1 %vm258_vm1, %v1582_v29 }
 0x9f4   :  { %v1550_v53 = vpop.f32.mrb[37].mxu1  ;;  %v1579_v50 = vmul.f32 %v2699_v51, %v2475_v23  ;;  %v2716_v23 = vld [vmem:[%s3474_s0 + $0x10] sm:$0xff] }
 0x9f5   :  { %v2476_v63 = vpop.f32.mrb[38].mxu1  ;;  %v1577_v18 = vmul.f32 %v2697_v3, %v1550_v53 }
 0x9f6   :  { %v1580_v8 = vmul.f32 %v2701_v26, %v2476_v63  ;;  %v1553_v37 = vpop.f32.mrb[39].mxu1 }
 0x9f7   :  { %v1578_v4 = vmul.f32 %v2703_v7, %v1553_v37  ;;  %v2717_v7 = vld [vmem:[%s3474_s0 + $0x28] sm:$0xff] }
 0x9f8   :  { %v1584_v28 = vpack.c.bf16 %v1580_v8, %v1579_v50  ;;  %v2718_v8 = vld [vmem:[%s3474_s0 + $0x20] sm:$0xff] }
 0x9f9   :  { %v1583_v11 = vpack.c.bf16 %v1578_v4, %v1577_v18 }
 0x9fb   :  { %2483 = vmatprep.mubr.msk.bf16.mxu1 %vm258_vm1, %v1583_v11  ;;  %v2719_v11 = vld [vmem:[%s3474_s0 + $0x38] sm:$0xff] }
 0x9fc   :  { %2484 = vmatmul.mubr.msk.bf16.gmra.mrb[24].mxu1 %vm258_vm1, %v1584_v28 }
 0xac6   :  { %v2481_v41 = vpop.f32.mrb[28].mxu1 }
 0xac7   :  { %v2533_v17 = vadd.f32 %v2481_v41, %v3070_v20  ;;  %v1637_v6 = vpop.f32.mrb[29].mxu1 }
 0xac8   :  { %v2534_v46 = vadd.f32 %v1637_v6, %v3072_v22  ;;  %v2482_v5 = vpop.f32.mrb[30].mxu1 }
 0xac9   :  { %v2535_v32 = vadd.f32 %v2482_v5, %v3074_v25  ;;  %v1640_v9 = vpop.f32.mrb[31].mxu1  ;;  %v1684_v22 = vadd.f32 %v2533_v17, %v3282_v10  ;;  %v2574_v25 = vld [vmem:[%s3479_s3] sm:$0xff]   ;;  %v2720_v17 = vld [vmem:[%s3474_s0 + $0x30] sm:$0xff] }
 0xaca   :  { %v1682_v42 = vadd.f32 %v2534_v46, %v3282_v10  ;;  %v2536_v52 = vadd.f32 %v1640_v9, %v3076_v39  ;;  %2487 = vmatprep.subr.bf16.mxu0 %v2574_v25  ;;  %v2234_v9 = vld [vmem:[%s3480_s6] ss:$0 sm:$0xff] }
 0xacb   :  { %v1685_v48 = vadd.f32 %v2535_v32, %v3282_v10  ;;  %2488 = vmatpush3.bf16.msra.mxu0 %v2574_v25 }
 0xacc   :  { %v1683_v62 = vadd.f32 %v2536_v52, %v3282_v10  ;;  %1698 = vrot.lane.b32.xlu0 %v1682_v42, %s2726_s29  ;;  %2489 = vmatprep.subr.bf16.mxu0 %v2575_v19 }
 0xace   :  { %1700 = vrot.lane.b32.xlu1 %v1683_v62, %s2726_s29 }
 0xacf   :  { %v2485_v20 = vpop.f32.mrb[24].mxu1  ;;  %2490 = vmatpush3.bf16.msra.mxu0 %v2575_v19 }
 0xad0   :  { %v1653_v55 = vpop.f32.mrb[25].mxu1  ;;  %1704 = vrot.lane.b32.xlu0 %v1685_v48, %s2726_s29  ;;  %v1688_v49 = vadd.f32 %v2485_v20, %v3282_v10 }
 0xad1   :  { %v2486_v39 = vpop.f32.mrb[26].mxu1  ;;  %v1686_v2 = vadd.f32 %v3282_v10, %v1653_v55 }
 0xad2   :  { %v1656_v0 = vpop.f32.mrb[27].mxu1  ;;  %1702 = vrot.lane.b32.xlu1 %v1684_v22, %s2726_s29  ;;  %v1689_v47 = vadd.f32 %v2486_v39, %v3282_v10 }
 0xad3   :  { %v1687_v12 = vadd.f32 %v3282_v10, %v1656_v0 }
 0xad5   :  { %1708 = vrot.lane.b32.xlu0 %v1687_v12, %s2726_s29 }
 0xad6   :  { %1706 = vrot.lane.b32.xlu1 %v1686_v2, %s2726_s29 }
 0xad9   :  { %1712 = vrot.lane.b32.xlu0 %v1689_v47, %s2726_s29 }
 0xada   :  { %1710 = vrot.lane.b32.xlu1 %v1688_v49, %s2726_s29 }
 0xb3e   :  { %v1699_v24 = vpop.permute.xlu0 %1698 }
 0xb3f   :  { %v1722_v27 = vmul.f32 %v3282_v10, %v1699_v24 }
 0xb40   :  { %v1701_v54 = vpop.permute.xlu1 %1700 }
 0xb41   :  { %v1723_v60 = vmul.f32 %v3282_v10, %v1701_v54  ;;  %1738 = vrot.lane.b32.xlu1 %v1722_v27, %s2724_s26 }
 0xb42   :  { %v1705_v57 = vpop.permute.xlu0 %1704 }
 0xb43   :  { %1740 = vrot.lane.b32.xlu0 %v1723_v60, %s2724_s26  ;;  %v1725_v31 = vmul.f32 %v3282_v10, %v1705_v57 }
 0xb44   :  { %v1703_v34 = vpop.permute.xlu1 %1702 }
 0xb45   :  { %v1724_v35 = vmul.f32 %v3282_v10, %v1703_v34 }
 0xb47   :  { %v1709_v38 = vpop.permute.xlu0 %1708  ;;  %1744 = vrot.lane.b32.xlu0 %v1725_v31, %s2724_s26  ;;  %1742 = vrot.lane.b32.xlu1 %v1724_v35, %s2724_s26 }
 0xb48   :  { %v1707_v56 = vpop.permute.xlu1 %1706  ;;  %v1727_v59 = vmul.f32 %v3282_v10, %v1709_v38 }
 0xb49   :  { %v1726_v30 = vmul.f32 %v3282_v10, %v1707_v56 }
 0xb4b   :  { %v1713_v40 = vpop.permute.xlu0 %1712  ;;  %1748 = vrot.lane.b32.xlu0 %v1727_v59, %s2724_s26  ;;  %1746 = vrot.lane.b32.xlu1 %v1726_v30, %s2724_s26 }
 0xb4c   :  { %v1711_v44 = vpop.permute.xlu1 %1710  ;;  %v1729_v15 = vmul.f32 %v3282_v10, %v1713_v40 }
 0xb4d   :  { %v1728_v61 = vmul.f32 %v3282_v10, %v1711_v44 }
 0xb4f   :  { %1752 = vrot.lane.b32.xlu0 %v1729_v15, %s2724_s26  ;;  %1750 = vrot.lane.b32.xlu1 %v1728_v61, %s2724_s26 }
 0xb53   :  { %1885 = vrot.lane.b32.xlu1 %v3157_v21, %s2724_s26  ;;  %1887 = vrot.lane.b32.xlu0 %v2712_v43, %s2724_s26 }
 0xb57   :  { %1889 = vrot.lane.b32.xlu1 %v3198_v36, %s2724_s26  ;;  %1891 = vrot.lane.b32.xlu0 %v3271_v58, %s2724_s26 }
 0xb5b   :  { %1989 = vrot.lane.b32.xlu1 %v3157_v21, %s2726_s29  ;;  %1991 = vrot.lane.b32.xlu0 %v2712_v43, %s2726_s29  ;;  %v2714_v21 = vld [vmem:[%s3474_s0 + $0x8] sm:$0xff] }
 0xb5f   :  { %1993 = vrot.lane.b32.xlu1 %v3198_v36, %s2726_s29  ;;  %1897 = vrot.lane.b32.xlu0 %v2234_v9, %s2722_s30 }
 0xb63   :  { %1995 = vrot.lane.b32.xlu1 %v3271_v58, %s2726_s29  ;;  %v2715_v58 = vld [vmem:[%s3474_s0 + $0x18] sm:$0xff]  ;;  %2001 = vrot.lane.b32.xlu0 %v3282_v10, %s2722_s30 }
 0xbb3   :  { %v1739_v1 = vpop.permute.xlu1 %1738 }
 0xbb4   :  { %v3346_v33 = vadd.f32 %v2713_v16, %v1739_v1 }
 0xbb5   :  { %v1741_v14 = vpop.permute.xlu0 %1740 }
 0xbb6   :  { %v3351_v13 = vadd.f32 %v2714_v21, %v1741_v14 }
 0xbb8   :  { %v1770_v36 = vpack.c.bf16 %v3351_v13, %v3346_v33 }
 0xbb9   :  { %v1745_v29 = vpop.permute.xlu0 %1744  ;;  %v1743_v45 = vpop.permute.xlu1 %1742 }
 0xbba   :  { %v3358_v3 = vadd.f32 %v2715_v58, %v1745_v29  ;;  %v3363_v51 = vadd.f32 %v2716_v23, %v1743_v45  ;;  %2491 = vmatprep.mubr.msk.bf16.mxu0 %vm86_vm0, %v1770_v36 }
 0xbbc   :  { %v1771_v53 = vpack.c.bf16 %v3358_v3, %v3363_v51 }
 0xbbd   :  { %v1749_v26 = vpop.permute.xlu0 %1748  ;;  %v1747_v63 = vpop.permute.xlu1 %1746 }
 0xbbe   :  { %v3371_v50 = vadd.f32 %v2717_v7, %v1749_v26  ;;  %v3376_v37 = vadd.f32 %v2718_v8, %v1747_v63  ;;  %2492 = vmatmul.mubr.msk.bf16.vlgmr.msra.gmra.mrb[52].mxu0 %vm86_vm0, %v1771_v53 }
 0xbc0   :  { %v1772_v18 = vpack.c.bf16 %v3371_v50, %v3376_v37 }
 0xbc1   :  { %v1753_v4 = vpop.permute.xlu0 %1752  ;;  %v1751_v28 = vpop.permute.xlu1 %1750 }
 0xbc2   :  { %v3384_v41 = vadd.f32 %v2719_v11, %v1753_v4  ;;  %v3389_v6 = vadd.f32 %v2720_v17, %v1751_v28  ;;  %2495 = vmatprep.mubr.msk.bf16.mxu0 %vm86_vm0, %v1772_v18 }
 0xbc4   :  { %v1773_v46 = vpack.c.bf16 %v3384_v41, %v3389_v6 }
 0xbc5   :  { %v1886_v5 = vpop.permute.xlu1 %1885  ;;  %v1888_v32 = vpop.permute.xlu0 %1887 }
 0xbc6   :  { %2496 = vmatmul.mubr.msk.bf16.gmra.mrb[56].mxu0 %vm86_vm0, %v1773_v46  ;;  %2499 = vmatprep.subr.bf16.mxu0 %v1886_v5 }
 0xbc7   :  { %2500 = vmatpush3.bf16.msra.mxu0 %v1886_v5 }
 0xbc8   :  { %2501 = vmatprep.subr.bf16.mxu0 %v1888_v32 }
 0xbc9   :  { %v1890_v42 = vpop.permute.xlu1 %1889  ;;  %v1892_v52 = vpop.permute.xlu0 %1891 }
 0xbcb   :  { %2502 = vmatpush3.bf16.msra.mxu0 %v1888_v32 }
 0xbcc   :  { %2503 = vmatprep.subr.bf16.mxu0 %v1890_v42 }
 0xbcd   :  { %v1990_v62 = vpop.permute.xlu1 %1989  ;;  %v1992_v48 = vpop.permute.xlu0 %1991 }
 0xbce   :  { %2515 = vmatprep.subr.bf16.mxu1 %v1990_v62 }
 0xbcf   :  { %2504 = vmatpush3.bf16.msra.mxu0 %v1890_v42  ;;  %2516 = vmatpush3.bf16.msra.mxu1 %v1990_v62 }
 0xbd0   :  { %2505 = vmatprep.subr.bf16.mxu0 %v1892_v52  ;;  %2517 = vmatprep.subr.bf16.mxu1 %v1992_v48 }
 0xbd1   :  { %v1994_v1 = vpop.permute.xlu1 %1993  ;;  %v1898_v16 = vpop.permute.xlu0 %1897 }
 0xbd3   :  { %2506 = vmatpush3.bf16.msra.mxu0 %v1892_v52  ;;  %2518 = vmatpush3.bf16.msra.mxu1 %v1992_v48 }
 0xbd4   :  { %2519 = vmatprep.subr.bf16.mxu1 %v1994_v1 }
 0xbd5   :  { %v1996_v14 = vpop.permute.xlu1 %1995 }
 0xbd7   :  { %2520 = vmatpush3.bf16.msra.mxu1 %v1994_v1 }
 0xbd8   :  { %2521 = vmatprep.subr.bf16.mxu1 %v1996_v14 }
 0xbdb   :  { %2522 = vmatpush3.bf16.msra.mxu1 %v1996_v14 }
 0xc91   :  { %v2493_v20 = vpop.f32.mrb[52].mxu0 }
 0xc92   :  { %v1851_v22 = vadd.f32 %v2493_v20, %v2234_v9  ;;  %v1842_v55 = vpop.f32.mrb[53].mxu0 }
 0xc93   :  { %v1843_v25 = vadd.f32 %v2234_v9, %v1842_v55  ;;  %v2494_v39 = vpop.f32.mrb[54].mxu0 }
 0xc94   :  { %v1854_v0 = vadd.f32 %v2494_v39, %v2234_v9  ;;  %v1845_v12 = vpop.f32.mrb[55].mxu0  ;;  %v1875_v47 = vmax.f32 %v1851_v22, 0.0  ;;  %v2002_v39 = vpop.permute.xlu0 %2001 }
 0xc95   :  { %v1846_v2 = vadd.f32 %v2234_v9, %v1845_v12  ;;  %v1873_v19 = vmax.f32 %v1843_v25, 0.0 }
 0xc96   :  { %v1876_v49 = vmax.f32 %v1854_v0, 0.0 }
 0xc97   :  { %v1874_v24 = vmax.f32 %v1846_v2, 0.0 }
 0xc98   :  { %v1882_v27 = vpack.c.bf16 %v1876_v49, %v1875_v47 }
 0xc99   :  { %v1881_v54 = vpack.c.bf16 %v1874_v24, %v1873_v19  ;;  %v2497_v60 = vpop.f32.mrb[56].mxu0 }
 0xc9a   :  { %v1867_v57 = vadd.f32 %v2497_v60, %v2234_v9  ;;  %v1858_v34 = vpop.f32.mrb[57].mxu0 }
 0xc9b   :  { %v1859_v31 = vadd.f32 %v2234_v9, %v1858_v34  ;;  %v2498_v35 = vpop.f32.mrb[58].mxu0  ;;  %2507 = vmatprep.mubr.msk.bf16.mxu0 %vm336_vm2, %v1881_v54 }
 0xc9c   :  { %v1870_v38 = vadd.f32 %v2498_v35, %v2234_v9  ;;  %v1861_v56 = vpop.f32.mrb[59].mxu0  ;;  %2508 = vmatmul.mubr.msk.bf16.vlgmr.msra.gmra.mrb[60].mxu0 %vm336_vm2, %v1882_v27  ;;  %v1879_v30 = vmax.f32 %v1867_v57, 0.0 }
 0xc9d   :  { %v1862_v59 = vadd.f32 %v2234_v9, %v1861_v56  ;;  %v1877_v44 = vmax.f32 %v1859_v31, 0.0 }
 0xc9e   :  { %v1880_v40 = vmax.f32 %v1870_v38, 0.0 }
 0xc9f   :  { %v1878_v15 = vmax.f32 %v1862_v59, 0.0 }
 0xca0   :  { %v1884_v61 = vpack.c.bf16 %v1880_v40, %v1879_v30 }
 0xca1   :  { %v1883_v43 = vpack.c.bf16 %v1878_v15, %v1877_v44 }
 0xca3   :  { %2511 = vmatprep.mubr.msk.bf16.mxu0 %vm336_vm2, %v1883_v43 }
 0xca4   :  { %2512 = vmatmul.mubr.msk.bf16.gmra.mrb[64].mxu0 %vm336_vm2, %v1884_v61 }
 0xd6f   :  { %v2509_v21 = vpop.f32.mrb[60].mxu0 }
 0xd70   :  { %v1955_v36 = vadd.f32 %v2509_v21, %v1898_v16  ;;  %v1946_v29 = vpop.f32.mrb[61].mxu0 }
 0xd71   :  { %v1947_v45 = vadd.f32 %v1946_v29, %v1898_v16  ;;  %v2510_v58 = vpop.f32.mrb[62].mxu0 }
 0xd72   :  { %v1958_v23 = vadd.f32 %v2510_v58, %v1898_v16  ;;  %v1949_v53 = vpop.f32.mrb[63].mxu0  ;;  %v1979_v63 = vmax.f32 %v1955_v36, 0.0 }
 0xd73   :  { %v1950_v26 = vadd.f32 %v1949_v53, %v1898_v16  ;;  %v1977_v8 = vmax.f32 %v1947_v45, 0.0 }
 0xd74   :  { %v1980_v7 = vmax.f32 %v1958_v23, 0.0 }
 0xd75   :  { %v1978_v18 = vmax.f32 %v1950_v26, 0.0 }
 0xd76   :  { %v1986_v4 = vpack.c.bf16 %v1980_v7, %v1979_v63 }
 0xd77   :  { %v1985_v28 = vpack.c.bf16 %v1978_v18, %v1977_v8  ;;  %v2513_v11 = vpop.f32.mrb[64].mxu0 }
 0xd78   :  { %v1971_v17 = vadd.f32 %v2513_v11, %v1898_v16  ;;  %v1962_v46 = vpop.f32.mrb[65].mxu0 }
 0xd79   :  { %v1963_v5 = vadd.f32 %v1962_v46, %v1898_v16  ;;  %v2514_v32 = vpop.f32.mrb[66].mxu0  ;;  %2523 = vmatprep.mubr.msk.bf16.mxu1 %vm336_vm2, %v1985_v28 }
 0xd7a   :  { %v1974_v9 = vadd.f32 %v2514_v32, %v1898_v16  ;;  %v1965_v42 = vpop.f32.mrb[67].mxu0  ;;  %2524 = vmatmul.mubr.msk.bf16.vlgmr.msra.gmra.mrb[40].mxu1 %vm336_vm2, %v1986_v4  ;;  %v1983_v62 = vmax.f32 %v1971_v17, 0.0 }
 0xd7b   :  { %v1966_v52 = vadd.f32 %v1965_v42, %v1898_v16  ;;  %v1981_v20 = vmax.f32 %v1963_v5, 0.0 }
 0xd7c   :  { %v1984_v48 = vmax.f32 %v1974_v9, 0.0 }
 0xd7d   :  { %v1982_v22 = vmax.f32 %v1966_v52, 0.0 }
 0xd7e   :  { %v1988_v55 = vpack.c.bf16 %v1984_v48, %v1983_v62 }
 0xd7f   :  { %v1987_v25 = vpack.c.bf16 %v1982_v22, %v1981_v20 }
 0xd81   :  { %2527 = vmatprep.mubr.msk.bf16.mxu1 %vm336_vm2, %v1987_v25 }
 0xd82   :  { %2528 = vmatmul.mubr.msk.bf16.gmra.mrb[44].mxu1 %vm336_vm2, %v1988_v55 }
 0xe4d   :  { %v2525_v0 = vpop.f32.mrb[40].mxu1 }
 0xe4e   :  { %v2059_v12 = vadd.f32 %v2525_v0, %v2002_v39  ;;  %v2050_v2 = vpop.f32.mrb[41].mxu1 }
 0xe4f   :  { %v2526_v47 = vpop.f32.mrb[42].mxu1  ;;  %v2051_v24 = vadd.f32 %v2050_v2, %v2002_v39 }
 0xe50   :  { %v2062_v49 = vadd.f32 %v2526_v47, %v2002_v39  ;;  %2093 = vrot.lane.b32.xlu1 %v2059_v12, %s2726_s29  ;;  %v2053_v19 = vpop.f32.mrb[43].mxu1 }
 0xe51   :  { %v2054_v27 = vadd.f32 %v2053_v19, %v2002_v39 }
 0xe52   :  { %2095 = vrot.lane.b32.xlu0 %v2062_v49, %s2726_s29 }
 0xe54   :  { %2089 = vrot.lane.b32.xlu1 %v2051_v24, %s2726_s29 }
 0xe55   :  { %v2529_v54 = vpop.f32.mrb[44].mxu1 }
 0xe56   :  { %v2066_v60 = vpop.f32.mrb[45].mxu1  ;;  %2091 = vrot.lane.b32.xlu0 %v2054_v27, %s2726_s29  ;;  %v2075_v38 = vadd.f32 %v2529_v54, %v2002_v39 }
 0xe57   :  { %v2067_v57 = vadd.f32 %v2066_v60, %v2002_v39  ;;  %v2530_v34 = vpop.f32.mrb[46].mxu1 }
 0xe58   :  { %v2069_v31 = vpop.f32.mrb[47].mxu1  ;;  %v2078_v56 = vadd.f32 %v2530_v34, %v2002_v39 }
 0xe59   :  { %v2070_v35 = vadd.f32 %v2069_v31, %v2002_v39  ;;  %2097 = vrot.lane.b32.xlu1 %v2067_v57, %s2726_s29 }
 0xe5b   :  { %2099 = vrot.lane.b32.xlu0 %v2070_v35, %s2726_s29 }
 0xe5d   :  { %2101 = vrot.lane.b32.xlu1 %v2075_v38, %s2726_s29 }
 0xe5f   :  { %2103 = vrot.lane.b32.xlu0 %v2078_v56, %s2726_s29 }
 0xec2   :  { %v2094_v59 = vpop.permute.xlu1 %2093 }
 0xec3   :  { %v2115_v30 = vmul.f32 %v3282_v10, %v2094_v59 }
 0xec4   :  { %v2096_v40 = vpop.permute.xlu0 %2095 }
 0xec5   :  { %v2116_v44 = vmul.f32 %v3282_v10, %v2096_v40  ;;  %2133 = vrot.lane.b32.xlu1 %v2115_v30, %s2724_s26 }
 0xec6   :  { %v2090_v15 = vpop.permute.xlu1 %2089 }
 0xec7   :  { %v2113_v61 = vmul.f32 %v3282_v10, %v2090_v15  ;;  %2135 = vrot.lane.b32.xlu0 %v2116_v44, %s2724_s26 }
 0xec8   :  { %v2092_v43 = vpop.permute.xlu0 %2091 }
 0xec9   :  { %v2114_v1 = vmul.f32 %v3282_v10, %v2092_v43  ;;  %2129 = vrot.lane.b32.xlu1 %v2113_v61, %s2724_s26 }
 0xecb   :  { %2131 = vrot.lane.b32.xlu0 %v2114_v1, %s2724_s26  ;;  %v2098_v14 = vpop.permute.xlu1 %2097 }
 0xecc   :  { %v2117_v16 = vmul.f32 %v3282_v10, %v2098_v14 }
 0xecd   :  { %v2100_v21 = vpop.permute.xlu0 %2099 }
 0xece   :  { %v2118_v36 = vmul.f32 %v3282_v10, %v2100_v21  ;;  %2137 = vrot.lane.b32.xlu1 %v2117_v16, %s2724_s26 }
 0xecf   :  { %v2102_v29 = vpop.permute.xlu1 %2101 }
 0xed0   :  { %v2119_v45 = vmul.f32 %v3282_v10, %v2102_v29  ;;  %2139 = vrot.lane.b32.xlu0 %v2118_v36, %s2724_s26 }
 0xed1   :  { %v2104_v58 = vpop.permute.xlu0 %2103 }
 0xed2   :  { %v2120_v23 = vmul.f32 %v3282_v10, %v2104_v58  ;;  %2141 = vrot.lane.b32.xlu1 %v2119_v45, %s2724_s26 }
 0xed4   :  { %2143 = vrot.lane.b32.xlu0 %v2120_v23, %s2724_s26 }
 0xf37   :  { %v2134_v53 = vpop.permute.xlu1 %2133 }
 0xf38   :  { %v2155_v26 = vadd.f32 %v2134_v53, %v3363_v51 }
 0xf39   :  { %v2136_v63 = vpop.permute.xlu0 %2135 }
 0xf3a   :  { %2163 = vst.msk [vmem:[%s3481_s8 + $0x10] sm:$0xff] %vm86_vm0, %v2155_v26  ;;  %v2156_v7 = vadd.f32 %v2136_v63, %v3358_v3 }
 0xf3b   :  { %v2130_v8 = vpop.permute.xlu1 %2129 }
 0xf3c   :  { %2164 = vst.msk [vmem:[%s3481_s8 + $0x18] sm:$0xff] %vm86_vm0, %v2156_v7  ;;  %v2153_v10 = vadd.f32 %v2130_v8, %v3346_v33 }
 0xf3d   :  { %v2132_v18 = vpop.permute.xlu0 %2131 }
 0xf3e   :  { %2161 = vst.msk [vmem:[%s3481_s8] sm:$0xff] %vm86_vm0, %v2153_v10  ;;  %v2154_v51 = vadd.f32 %v2132_v18, %v3351_v13 }
 0xf40   :  { %2162 = vst.msk [vmem:[%s3481_s8 + $0x8] sm:$0xff] %vm86_vm0, %v2154_v51  ;;  %v2138_v3 = vpop.permute.xlu1 %2137 }
 0xf41   :  { %v2157_v4 = vadd.f32 %v2138_v3, %v3376_v37 }
 0xf42   :  { %v2140_v28 = vpop.permute.xlu0 %2139 }
 0xf43   :  { %2165 = vst.msk [vmem:[%s3481_s8 + $0x20] sm:$0xff] %vm86_vm0, %v2157_v4  ;;  %v2158_v33 = vadd.f32 %v2140_v28, %v3371_v50 }
 0xf44   :  { %v2142_v11 = vpop.permute.xlu1 %2141 }
 0xf45   :  { %2166 = vst.msk [vmem:[%s3481_s8 + $0x28] sm:$0xff] %vm86_vm0, %v2158_v33  ;;  %v2159_v13 = vadd.f32 %v2142_v11, %v3389_v6 }
 0xf46   :  { %v2144_v17 = vpop.permute.xlu0 %2143 }
 0xf47   :  { %2167 = vst.msk [vmem:[%s3481_s8 + $0x30] sm:$0xff] %vm86_vm0, %v2159_v13  ;;  %v2160_v37 = vadd.f32 %v2144_v17, %v3384_v41 }
 0xf49   :  { %2168 = vst.msk [vmem:[%s3481_s8 + $0x38] sm:$0xff] %vm86_vm0, %v2160_v37 }

</bundles_post_ra>
